<compile_context>
chip_gen: v6e
topology: v6e:2x2x1
jax: 0.10.0
libtpu: 0.0.40
codegen_flags: <defaults>
</compile_context>

<pallas_src>
import functools

import numpy as np
import jax
import jax.numpy as jnp
from jax.experimental import pallas as pl
from jax.experimental.pallas import tpu as pltpu


# ----------------------------- in-kernel helpers -----------------------------

def _layernorm(x, w, b, eps=1e-6):
    # x: [R, D] (f32), w/b: [1, D]
    mu = jnp.mean(x, axis=-1, keepdims=True)
    xc = x - mu
    var = jnp.mean(xc * xc, axis=-1, keepdims=True)
    return xc * jax.lax.rsqrt(var + eps) * w + b


# --------------------------------- fused kernel --------------------------------

def encoder_kernel(x_ref, embw_ref, embb_ref, pe_ref,
                   ln1w_ref, ln1b_ref,
                   wq_ref, bq_ref, wk_ref, bk_ref, wv_ref, bv_ref,
                   wo_ref, bo_ref, ln2w_ref, ln2b_ref,
                   fc1w_ref, fc1b_ref, fc2w_ref, fc2b_ref,
                   nw_ref, nb_ref,
                   o_ref, res_ref, *, num_heads):
    l = pl.program_id(1)                       # layer index ('arbitrary' axis)
    bn, T, Cp = x_ref.shape
    D = embw_ref.shape[1]
    R = bn * T
    dh = D // num_heads
    scale = dh ** -0.5

    # ---- layer 0: Embed (Linear C->D) + positional encoding; init resident stream ----
    @pl.when(l == 0)
    def _():
        xh = x_ref[...].reshape(R, Cp).astype(jnp.bfloat16)
        h = jnp.dot(xh, embw_ref[...], preferred_element_type=jnp.float32)       # [R, D]
        # pos_drop = 0 in eval mode -> plain add of sinusoidal PE
        res_ref[...] = h.reshape(bn, T, D) + embb_ref[...] + pe_ref[...]

    # ---- pre-norm transformer block `l` on the VMEM-resident residual stream ----
    x2 = res_ref[...].reshape(R, D)                                               # f32

    # Attention branch: per-head weights indexed on a leading axis (no lane slicing),
    # head outputs folded directly into the output-projection accumulation (no concat).
    hn = _layernorm(x2, ln1w_ref[0], ln1b_ref[0]).astype(jnp.bfloat16)
    wq, wk, wv, wo = wq_ref[0], wk_ref[0], wv_ref[0], wo_ref[0]
    qb, kb, vb = bq_ref[0], bk_ref[0], bv_ref[0]
    attn = jnp.zeros((R, D), jnp.float32)
    for hd in range(num_heads):                 # static unroll over heads
        q = jnp.dot(hn, wq[hd], preferred_element_type=jnp.float32) + qb[hd]      # [R, dh]
        k = jnp.dot(hn, wk[hd], preferred_element_type=jnp.float32) + kb[hd]
        v = jnp.dot(hn, wv[hd], preferred_element_type=jnp.float32) + vb[hd]
        q3 = (q * scale).reshape(bn, T, dh).astype(jnp.bfloat16)
        k3 = k.reshape(bn, T, dh).astype(jnp.bfloat16)
        v3 = v.reshape(bn, T, dh).astype(jnp.bfloat16)
        s = jnp.einsum("bqd,bkd->bqk", q3, k3,
                       preferred_element_type=jnp.float32)                        # [bn, T, T]
        s = s - jnp.max(s, axis=-1, keepdims=True)
        e = jnp.exp(s)
        p = e * pl.reciprocal(jnp.sum(e, axis=-1, keepdims=True), approx=True)    # EUP divide
        oh = jnp.einsum("bqk,bkd->bqd", p.astype(jnp.bfloat16), v3,
                        preferred_element_type=jnp.float32)                       # [bn, T, dh]
        attn = attn + jnp.dot(oh.reshape(R, dh).astype(jnp.bfloat16), wo[hd],
                              preferred_element_type=jnp.float32)                 # [R, D]
    x2 = x2 + attn + bo_ref[0]

    # MLP branch
    hn2 = _layernorm(x2, ln2w_ref[0], ln2b_ref[0]).astype(jnp.bfloat16)
    m = jnp.dot(hn2, fc1w_ref[0], preferred_element_type=jnp.float32) + fc1b_ref[0]
    # TODO(synk): PyTorch nn.GELU() is exact erf-GELU; tanh approximation used for Mosaic-safe lowering.
    m = jax.nn.gelu(m, approximate=True)
    m = jnp.dot(m.astype(jnp.bfloat16), fc2w_ref[0],
                preferred_element_type=jnp.float32) + fc2b_ref[0]
    x2 = x2 + m
    res_ref[...] = x2.reshape(bn, T, D)

    # ---- final LayerNorm (eps=1e-6), written once on the last layer ----
    @pl.when(l == pl.num_programs(1) - 1)
    def _():
        o_ref[...] = _layernorm(x2, nw_ref[...], nb_ref[...]).reshape(bn, T, D)


# ------------------------------ pallas wrapper --------------------------------

def encoder_forward(x, params, num_heads, mask_ratio=0.0, batch_block=None):
    # random_masking is a training-time op (eval mode / mask_ratio=0.0 -> no-op).
    N, T, C = x.shape
    Cp, D = params["embed_w"].shape
    depth = params["wq"].shape[0]
    H = num_heads
    dh = D // H
    hidden = params["fc1_w"].shape[2]

    if Cp > C:                                  # lane-pad raw channel dim (zero weight rows)
        x = jnp.pad(x, ((0, 0), (0, 0), (0, Cp - C)))

    if batch_block is None:
        # >=2 batch blocks -> leading 'parallel' axis can shard across v7x's 2 TensorCores,
        # while each block still feeds bn*T rows to every matmul.
        batch_block = N // 2 if (N % 2 == 0 and N > 1) else N
    bn = batch_block
    assert N % bn == 0, "batch_block must divide N"
    nb = N // bn
    grid = (nb, depth)

    def per_layer(shape):                       # weights stacked on a leading depth axis
        n_trailing = len(shape) - 1
        def imap(b, l):
            return (l,) + (0,) * n_trailing
        return pl.BlockSpec((1,) + tuple(shape[1:]), imap)

    def shared(shape):                          # resident for the whole call
        zeros = (0,) * len(shape)
        def imap(b, l):
            return zeros
        return pl.BlockSpec(tuple(shape), imap)

    arg_order = ["embed_w", "embed_b", "pe",
                 "ln1_w", "ln1_b", "wq", "bq", "wk", "bk", "wv", "bv",
                 "wo", "bo", "ln2_w", "ln2_b",
                 "fc1_w", "fc1_b", "fc2_w", "fc2_b",
                 "norm_w", "norm_b"]
    per_layer_names = {"ln1_w", "ln1_b", "wq", "bq", "wk", "bk", "wv", "bv",
                       "wo", "bo", "ln2_w", "ln2_b",
                       "fc1_w", "fc1_b", "fc2_w", "fc2_b"}
    w_args = [params[n] for n in arg_order]
    w_specs = [per_layer(params[n].shape) if n in per_layer_names else shared(params[n].shape)
               for n in arg_order]

    in_specs = [pl.BlockSpec((bn, T, Cp), lambda b, l: (b, 0, 0))] + w_specs
    out_specs = pl.BlockSpec((bn, T, D), lambda b, l: (b, 0, 0))

    flops = (2 * N * T * Cp * D
             + depth * (8 * N * T * D * D            # qkv + proj
                        + 4 * N * H * T * T * dh     # scores + AV
                        + 4 * N * T * D * hidden))   # fc1 + fc2
    transcendentals = depth * (N * H * T * T + N * T * hidden)
    bytes_accessed = (x.size * x.dtype.itemsize + N * T * D * 4
                      + sum(int(p.size) * p.dtype.itemsize for p in w_args))

    out = pl.pallas_call(
        functools.partial(encoder_kernel, num_heads=H),
        out_shape=jax.ShapeDtypeStruct((N, T, D), jnp.float32),
        grid=grid,
        in_specs=in_specs,
        out_specs=out_specs,
        scratch_shapes=[pltpu.VMEM((bn, T, D), jnp.float32)],   # resident residual stream
        compiler_params=pltpu.CompilerParams(
            dimension_semantics=("parallel", "arbitrary"),
            vmem_limit_bytes=32 * 1024 * 1024),
        cost_estimate=pl.CostEstimate(flops=int(flops),
                                      transcendentals=int(transcendentals),
                                      bytes_accessed=int(bytes_accessed)),
    )(x, *w_args)

    return out, None, None, None


# -------------------------- parameter construction ---------------------------

def _sinusoidal_pe(T, D):
    pos = np.arange(T, dtype=np.float32)[:, None]
    i = np.arange(0, D, 2, dtype=np.float32)[None, :]
    angle = pos / np.power(10000.0, i / D)
    pe = np.zeros((T, D), dtype=np.float32)
    pe[:, 0::2] = np.sin(angle)
    pe[:, 1::2] = np.cos(angle)
    return jnp.asarray(pe)


def init_encoder_params(key, channels, embed_dim, depth, num_heads, mlp_ratio, max_len):
    D, H = embed_dim, num_heads
    dh = D // H
    hidden = int(D * mlp_ratio)
    Cp = ((channels + 127) // 128) * 128        # lane-pad raw channel dim to 128 multiple
    keys = jax.random.split(key, depth + 1)

    def xavier(k, fan_in, fan_out):
        bound = float(np.sqrt(6.0 / (fan_in + fan_out)))
        return jax.random.uniform(k, (fan_in, fan_out), jnp.float32, -bound, bound)

    embed_w = xavier(keys[0], channels, D)
    embed_w = jnp.pad(embed_w, ((0, Cp - channels), (0, 0)))    # zero rows for padded lanes

    wq, wk, wv, bq, bk, bv = [], [], [], [], [], []
    wo, bo, ln1w, ln1b, ln2w, ln2b = [], [], [], [], [], []
    fc1w, fc1b, fc2w, fc2b = [], [], [], []
    for d in range(depth):
        kk = jax.random.split(keys[d + 1], 4)
        qkv = xavier(kk[0], D, 3 * D).reshape(D, 3, H, dh)      # fused qkv Linear init
        wq.append(jnp.transpose(qkv[:, 0], (1, 0, 2)))          # [H, D, dh]
        wk.append(jnp.transpose(qkv[:, 1], (1, 0, 2)))
        wv.append(jnp.transpose(qkv[:, 2], (1, 0, 2)))
        bq.append(jnp.zeros((H, 1, dh), jnp.float32))
        bk.append(jnp.zeros((H, 1, dh), jnp.float32))
        bv.append(jnp.zeros((H, 1, dh), jnp.float32))
        wo.append(xavier(kk[1], D, D).reshape(H, dh, D))        # proj rows grouped by head
        bo.append(jnp.zeros((1, D), jnp.float32))
        ln1w.append(jnp.ones((1, D), jnp.float32)); ln1b.append(jnp.zeros((1, D), jnp.float32))
        ln2w.append(jnp.ones((1, D), jnp.float32)); ln2b.append(jnp.zeros((1, D), jnp.float32))
        fc1w.append(xavier(kk[2], D, hidden)); fc1b.append(jnp.zeros((1, hidden), jnp.float32))
        fc2w.append(xavier(kk[3], hidden, D)); fc2b.append(jnp.zeros((1, D), jnp.float32))

    stack = lambda xs, dt=jnp.float32: jnp.stack(xs).astype(dt)
    return {
        # bf16 matmul inputs; biases / LN params / PE stay f32 (f32 elementwise path).
        "embed_w": embed_w.astype(jnp.bfloat16),
        "embed_b": jnp.zeros((1, D), jnp.float32),
        "pe": _sinusoidal_pe(max_len, D),
        "ln1_w": stack(ln1w), "ln1_b": stack(ln1b),
        "wq": stack(wq, jnp.bfloat16), "bq": stack(bq),
        "wk": stack(wk, jnp.bfloat16), "bk": stack(bk),
        "wv": stack(wv, jnp.bfloat16), "bv": stack(bv),
        "wo": stack(wo, jnp.bfloat16), "bo": stack(bo),
        "ln2_w": stack(ln2w), "ln2_b": stack(ln2b),
        "fc1_w": stack(fc1w, jnp.bfloat16), "fc1_b": stack(fc1b),
        "fc2_w": stack(fc2w, jnp.bfloat16), "fc2_b": stack(fc2b),
        "norm_w": jnp.ones((1, D), jnp.float32),
        "norm_b": jnp.zeros((1, D), jnp.float32),
    }


# ----------------------------------- main -------------------------------------

if __name__ == "__main__":
    N, T, C = 2, 8, 16              # batch, sequence length, input channels
    embed_dim, depth, num_heads, mlp_ratio = 32, 2, 4, 4.0

    key = jax.random.PRNGKey(0)
    k_x, k_p = jax.random.split(key)
    x = jax.random.normal(k_x, (N, T, C), dtype=jnp.float32)

    params = init_encoder_params(k_p, C, embed_dim, depth, num_heads, mlp_ratio, T)

    out, mask, ids_restore, ids_keep = encoder_forward(x, params, num_heads, mask_ratio=0.0)
    out = jax.block_until_ready(out)

    assert out.shape == (N, T, embed_dim), out.shape
    assert bool(jnp.all(jnp.isfinite(out)))
    assert mask is None and ids_restore is None and ids_keep is None
    print("KERNEL_OK")
</pallas_src>

<mosaic_0001>
module attributes {stable_mosaic.version = 11 : i64} {
  func.func @encoder_kernel(%arg0: i32, %arg1: i32, %arg2: memref<1x8x128xf32, #tpu.memory_space<vmem>>, %arg3: memref<128x32xbf16, #tpu.memory_space<vmem>>, %arg4: memref<1x32xf32, #tpu.memory_space<vmem>>, %arg5: memref<8x32xf32, #tpu.memory_space<vmem>>, %arg6: memref<1x1x32xf32, #tpu.memory_space<vmem>>, %arg7: memref<1x1x32xf32, #tpu.memory_space<vmem>>, %arg8: memref<1x4x32x8xbf16, #tpu.memory_space<vmem>>, %arg9: memref<1x4x1x8xf32, #tpu.memory_space<vmem>>, %arg10: memref<1x4x32x8xbf16, #tpu.memory_space<vmem>>, %arg11: memref<1x4x1x8xf32, #tpu.memory_space<vmem>>, %arg12: memref<1x4x32x8xbf16, #tpu.memory_space<vmem>>, %arg13: memref<1x4x1x8xf32, #tpu.memory_space<vmem>>, %arg14: memref<1x4x8x32xbf16, #tpu.memory_space<vmem>>, %arg15: memref<1x1x32xf32, #tpu.memory_space<vmem>>, %arg16: memref<1x1x32xf32, #tpu.memory_space<vmem>>, %arg17: memref<1x1x32xf32, #tpu.memory_space<vmem>>, %arg18: memref<1x32x128xbf16, #tpu.memory_space<vmem>>, %arg19: memref<1x1x128xf32, #tpu.memory_space<vmem>>, %arg20: memref<1x128x32xbf16, #tpu.memory_space<vmem>>, %arg21: memref<1x1x32xf32, #tpu.memory_space<vmem>>, %arg22: memref<1x32xf32, #tpu.memory_space<vmem>>, %arg23: memref<1x32xf32, #tpu.memory_space<vmem>>, %arg24: memref<1x8x32xf32, #tpu.memory_space<vmem>>, %arg25: memref<1x8x32xf32, #tpu.memory_space<vmem>>) attributes {dimension_semantics = [#tpu.dimension_semantics<parallel>, #tpu.dimension_semantics<arbitrary>], iteration_bounds = array<i64: 2, 2>, scalar_prefetch = 0 : i64, scratch_operands = 1 : i64, tpu.core_type = #tpu.core_type<tc>, window_params = [{transform_indices = @transform_0, window_bounds = array<i64: 1, 8, 128>}, {pipeline_mode = #tpu.pipeline_mode<synchronous>, transform_indices = @transform_1, window_bounds = array<i64: 128, 32>}, {pipeline_mode = #tpu.pipeline_mode<synchronous>, transform_indices = @transform_2, window_bounds = array<i64: 1, 32>}, {pipeline_mode = #tpu.pipeline_mode<synchronous>, transform_indices = @transform_3, window_bounds = array<i64: 8, 32>}, {transform_indices = @transform_4, window_bounds = array<i64: 1, 1, 32>}, {transform_indices = @transform_5, window_bounds = array<i64: 1, 1, 32>}, {transform_indices = @transform_6, window_bounds = array<i64: 1, 4, 32, 8>}, {transform_indices = @transform_7, window_bounds = array<i64: 1, 4, 1, 8>}, {transform_indices = @transform_8, window_bounds = array<i64: 1, 4, 32, 8>}, {transform_indices = @transform_9, window_bounds = array<i64: 1, 4, 1, 8>}, {transform_indices = @transform_10, window_bounds = array<i64: 1, 4, 32, 8>}, {transform_indices = @transform_11, window_bounds = array<i64: 1, 4, 1, 8>}, {transform_indices = @transform_12, window_bounds = array<i64: 1, 4, 8, 32>}, {transform_indices = @transform_13, window_bounds = array<i64: 1, 1, 32>}, {transform_indices = @transform_14, window_bounds = array<i64: 1, 1, 32>}, {transform_indices = @transform_15, window_bounds = array<i64: 1, 1, 32>}, {transform_indices = @transform_16, window_bounds = array<i64: 1, 32, 128>}, {transform_indices = @transform_17, window_bounds = array<i64: 1, 1, 128>}, {transform_indices = @transform_18, window_bounds = array<i64: 1, 128, 32>}, {transform_indices = @transform_19, window_bounds = array<i64: 1, 1, 32>}, {pipeline_mode = #tpu.pipeline_mode<synchronous>, transform_indices = @transform_20, window_bounds = array<i64: 1, 32>}, {pipeline_mode = #tpu.pipeline_mode<synchronous>, transform_indices = @transform_21, window_bounds = array<i64: 1, 32>}, {transform_indices = @transform_22, window_bounds = array<i64: 1, 8, 32>}]} {
    %c0_i32 = arith.constant 0 : i32
    %0 = arith.cmpi eq, %arg1, %c0_i32 : i32
    %1 = arith.extui %0 : i1 to i32
    %c0_i32_0 = arith.constant 0 : i32
    %2 = arith.cmpi ne, %1, %c0_i32_0 : i32
    scf.if %2 {
      %c0_114 = arith.constant 0 : index
      %c0_115 = arith.constant 0 : index
      %c0_116 = arith.constant 0 : index
      %301 = vector.load %arg2[%c0_114, %c0_115, %c0_116] : memref<1x8x128xf32, #tpu.memory_space<vmem>>, vector<1x8x128xf32>
      %302 = vector.shape_cast %301 : vector<1x8x128xf32> to vector<8x128xf32>
      %303 = arith.truncf %302 : vector<8x128xf32> to vector<8x128xbf16>
      %c0_117 = arith.constant 0 : index
      %c0_118 = arith.constant 0 : index
      %304 = vector.load %arg3[%c0_117, %c0_118] : memref<128x32xbf16, #tpu.memory_space<vmem>>, vector<128x32xbf16>
      %cst_119 = arith.constant dense<0.000000e+00> : vector<8x32xf32>
      %305 = tpu.matmul %303, %304, %cst_119 {dimension_numbers = #tpu.dot_dimension_numbers<[1], [0], [0], [1], [0, 0, 1, 1], [], []>} : vector<8x128xbf16>, vector<128x32xbf16>, vector<8x32xf32> -> vector<8x32xf32>
      %306 = vector.shape_cast %305 : vector<8x32xf32> to vector<1x8x32xf32>
      %c0_120 = arith.constant 0 : index
      %c0_121 = arith.constant 0 : index
      %307 = vector.load %arg4[%c0_120, %c0_121] : memref<1x32xf32, #tpu.memory_space<vmem>>, vector<1x32xf32>
      %308 = vector.shape_cast %307 : vector<1x32xf32> to vector<1x1x32xf32>
      %309 = vector.broadcast %308 : vector<1x1x32xf32> to vector<1x8x32xf32>
      %310 = arith.addf %306, %309 : vector<1x8x32xf32>
      %c0_122 = arith.constant 0 : index
      %c0_123 = arith.constant 0 : index
      %311 = vector.load %arg5[%c0_122, %c0_123] : memref<8x32xf32, #tpu.memory_space<vmem>>, vector<8x32xf32>
      %312 = vector.shape_cast %311 : vector<8x32xf32> to vector<1x8x32xf32>
      %313 = arith.addf %310, %312 : vector<1x8x32xf32>
      %c0_124 = arith.constant 0 : index
      %c0_125 = arith.constant 0 : index
      %c0_126 = arith.constant 0 : index
      %314 = vector.load %arg25[%c0_124, %c0_125, %c0_126] : memref<1x8x32xf32, #tpu.memory_space<vmem>>, vector<1x8x32xf32>
      tpu.vector_store %arg25[%c0_124, %c0_125, %c0_126], %313 {strides = array<i32>} : memref<1x8x32xf32, #tpu.memory_space<vmem>>, vector<1x8x32xf32>,
    } else {
    }
    %c0 = arith.constant 0 : index
    %c0_1 = arith.constant 0 : index
    %c0_2 = arith.constant 0 : index
    %3 = vector.load %arg25[%c0, %c0_1, %c0_2] : memref<1x8x32xf32, #tpu.memory_space<vmem>>, vector<1x8x32xf32>
    %4 = vector.shape_cast %3 : vector<1x8x32xf32> to vector<8x32xf32>
    %c0_3 = arith.constant 0 : index
    %c0_4 = arith.constant 0 : index
    %c0_5 = arith.constant 0 : index
    %5 = vector.load %arg6[%c0_3, %c0_4, %c0_5] : memref<1x1x32xf32, #tpu.memory_space<vmem>>, vector<1x1x32xf32>
    %6 = vector.shape_cast %5 : vector<1x1x32xf32> to vector<1x32xf32>
    %c0_6 = arith.constant 0 : index
    %c0_7 = arith.constant 0 : index
    %c0_8 = arith.constant 0 : index
    %7 = vector.load %arg7[%c0_6, %c0_7, %c0_8] : memref<1x1x32xf32, #tpu.memory_space<vmem>>, vector<1x1x32xf32>
    %8 = vector.shape_cast %7 : vector<1x1x32xf32> to vector<1x32xf32>
    %cst = arith.constant dense<0.000000e+00> : vector<8xf32>
    %9 = vector.multi_reduction <add>, %4, %cst [1] : vector<8x32xf32> to vector<8xf32>
    %10 = vector.shape_cast %9 : vector<8xf32> to vector<8x1xf32>
    %cst_9 = arith.constant 3.200000e+01 : f32
    %11 = vector.broadcast %cst_9 : f32 to vector<8x1xf32>
    %12 = arith.divf %10, %11 : vector<8x1xf32>
    %13 = vector.broadcast %12 : vector<8x1xf32> to vector<8x32xf32>
    %14 = arith.subf %4, %13 : vector<8x32xf32>
    %15 = arith.mulf %14, %14 : vector<8x32xf32>
    %cst_10 = arith.constant dense<0.000000e+00> : vector<8xf32>
    %16 = vector.multi_reduction <add>, %15, %cst_10 [1] : vector<8x32xf32> to vector<8xf32>
    %17 = vector.shape_cast %16 : vector<8xf32> to vector<8x1xf32>
    %cst_11 = arith.constant 3.200000e+01 : f32
    %18 = vector.broadcast %cst_11 : f32 to vector<8x1xf32>
    %19 = arith.divf %17, %18 : vector<8x1xf32>
    %cst_12 = arith.constant 9.99999997E-7 : f32
    %20 = vector.broadcast %cst_12 : f32 to vector<8x1xf32>
    %21 = arith.addf %19, %20 : vector<8x1xf32>
    %22 = math.rsqrt %21 : vector<8x1xf32>
    %23 = vector.broadcast %22 : vector<8x1xf32> to vector<8x32xf32>
    %24 = arith.mulf %14, %23 : vector<8x32xf32>
    %25 = vector.broadcast %6 : vector<1x32xf32> to vector<8x32xf32>
    %26 = arith.mulf %24, %25 : vector<8x32xf32>
    %27 = vector.broadcast %8 : vector<1x32xf32> to vector<8x32xf32>
    %28 = arith.addf %26, %27 : vector<8x32xf32>
    %29 = arith.truncf %28 : vector<8x32xf32> to vector<8x32xbf16>
    %c0_13 = arith.constant 0 : index
    %c0_14 = arith.constant 0 : index
    %c0_15 = arith.constant 0 : index
    %c0_16 = arith.constant 0 : index
    %30 = vector.load %arg8[%c0_13, %c0_14, %c0_15, %c0_16] : memref<1x4x32x8xbf16, #tpu.memory_space<vmem>>, vector<1x4x32x8xbf16>
    %31 = vector.shape_cast %30 : vector<1x4x32x8xbf16> to vector<4x32x8xbf16>
    %c0_17 = arith.constant 0 : index
    %c0_18 = arith.constant 0 : index
    %c0_19 = arith.constant 0 : index
    %c0_20 = arith.constant 0 : index
    %32 = vector.load %arg10[%c0_17, %c0_18, %c0_19, %c0_20] : memref<1x4x32x8xbf16, #tpu.memory_space<vmem>>, vector<1x4x32x8xbf16>
    %33 = vector.shape_cast %32 : vector<1x4x32x8xbf16> to vector<4x32x8xbf16>
    %c0_21 = arith.constant 0 : index
    %c0_22 = arith.constant 0 : index
    %c0_23 = arith.constant 0 : index
    %c0_24 = arith.constant 0 : index
    %34 = vector.load %arg12[%c0_21, %c0_22, %c0_23, %c0_24] : memref<1x4x32x8xbf16, #tpu.memory_space<vmem>>, vector<1x4x32x8xbf16>
    %35 = vector.shape_cast %34 : vector<1x4x32x8xbf16> to vector<4x32x8xbf16>
    %c0_25 = arith.constant 0 : index
    %c0_26 = arith.constant 0 : index
    %c0_27 = arith.constant 0 : index
    %c0_28 = arith.constant 0 : index
    %36 = vector.load %arg14[%c0_25, %c0_26, %c0_27, %c0_28] : memref<1x4x8x32xbf16, #tpu.memory_space<vmem>>, vector<1x4x8x32xbf16>
    %37 = vector.shape_cast %36 : vector<1x4x8x32xbf16> to vector<4x8x32xbf16>
    %c0_29 = arith.constant 0 : index
    %c0_30 = arith.constant 0 : index
    %c0_31 = arith.constant 0 : index
    %c0_32 = arith.constant 0 : index
    %38 = vector.load %arg9[%c0_29, %c0_30, %c0_31, %c0_32] : memref<1x4x1x8xf32, #tpu.memory_space<vmem>>, vector<1x4x1x8xf32>
    %39 = vector.shape_cast %38 : vector<1x4x1x8xf32> to vector<4x1x8xf32>
    %c0_33 = arith.constant 0 : index
    %c0_34 = arith.constant 0 : index
    %c0_35 = arith.constant 0 : index
    %c0_36 = arith.constant 0 : index
    %40 = vector.load %arg11[%c0_33, %c0_34, %c0_35, %c0_36] : memref<1x4x1x8xf32, #tpu.memory_space<vmem>>, vector<1x4x1x8xf32>
    %41 = vector.shape_cast %40 : vector<1x4x1x8xf32> to vector<4x1x8xf32>
    %c0_37 = arith.constant 0 : index
    %c0_38 = arith.constant 0 : index
    %c0_39 = arith.constant 0 : index
    %c0_40 = arith.constant 0 : index
    %42 = vector.load %arg13[%c0_37, %c0_38, %c0_39, %c0_40] : memref<1x4x1x8xf32, #tpu.memory_space<vmem>>, vector<1x4x1x8xf32>
    %43 = vector.shape_cast %42 : vector<1x4x1x8xf32> to vector<4x1x8xf32>
    %cst_41 = arith.constant 0.000000e+00 : f32
    %44 = vector.broadcast %cst_41 : f32 to vector<8x32xf32>
    %45 = vector.extract_strided_slice %31 {offsets = [0, 0, 0], sizes = [1, 32, 8], strides = [1, 1, 1]} : vector<4x32x8xbf16> to vector<1x32x8xbf16>
    %46 = vector.shape_cast %45 : vector<1x32x8xbf16> to vector<32x8xbf16>
    %cst_42 = arith.constant dense<0.000000e+00> : vector<8x8xf32>
    %47 = tpu.matmul %29, %46, %cst_42 {dimension_numbers = #tpu.dot_dimension_numbers<[1], [0], [0], [1], [0, 0, 1, 1], [], []>} : vector<8x32xbf16>, vector<32x8xbf16>, vector<8x8xf32> -> vector<8x8xf32>
    %48 = vector.extract_strided_slice %39 {offsets = [0, 0, 0], sizes = [1, 1, 8], strides = [1, 1, 1]} : vector<4x1x8xf32> to vector<1x1x8xf32>
    %49 = vector.shape_cast %48 : vector<1x1x8xf32> to vector<1x8xf32>
    %50 = vector.broadcast %49 : vector<1x8xf32> to vector<8x8xf32>
    %51 = arith.addf %47, %50 : vector<8x8xf32>
    %52 = vector.extract_strided_slice %33 {offsets = [0, 0, 0], sizes = [1, 32, 8], strides = [1, 1, 1]} : vector<4x32x8xbf16> to vector<1x32x8xbf16>
    %53 = vector.shape_cast %52 : vector<1x32x8xbf16> to vector<32x8xbf16>
    %cst_43 = arith.constant dense<0.000000e+00> : vector<8x8xf32>
    %54 = tpu.matmul %29, %53, %cst_43 {dimension_numbers = #tpu.dot_dimension_numbers<[1], [0], [0], [1], [0, 0, 1, 1], [], []>} : vector<8x32xbf16>, vector<32x8xbf16>, vector<8x8xf32> -> vector<8x8xf32>
    %55 = vector.extract_strided_slice %41 {offsets = [0, 0, 0], sizes = [1, 1, 8], strides = [1, 1, 1]} : vector<4x1x8xf32> to vector<1x1x8xf32>
    %56 = vector.shape_cast %55 : vector<1x1x8xf32> to vector<1x8xf32>
    %57 = vector.broadcast %56 : vector<1x8xf32> to vector<8x8xf32>
    %58 = arith.addf %54, %57 : vector<8x8xf32>
    %59 = vector.extract_strided_slice %35 {offsets = [0, 0, 0], sizes = [1, 32, 8], strides = [1, 1, 1]} : vector<4x32x8xbf16> to vector<1x32x8xbf16>
    %60 = vector.shape_cast %59 : vector<1x32x8xbf16> to vector<32x8xbf16>
    %cst_44 = arith.constant dense<0.000000e+00> : vector<8x8xf32>
    %61 = tpu.matmul %29, %60, %cst_44 {dimension_numbers = #tpu.dot_dimension_numbers<[1], [0], [0], [1], [0, 0, 1, 1], [], []>} : vector<8x32xbf16>, vector<32x8xbf16>, vector<8x8xf32> -> vector<8x8xf32>
    %62 = vector.extract_strided_slice %43 {offsets = [0, 0, 0], sizes = [1, 1, 8], strides = [1, 1, 1]} : vector<4x1x8xf32> to vector<1x1x8xf32>
    %63 = vector.shape_cast %62 : vector<1x1x8xf32> to vector<1x8xf32>
    %64 = vector.broadcast %63 : vector<1x8xf32> to vector<8x8xf32>
    %65 = arith.addf %61, %64 : vector<8x8xf32>
    %cst_45 = arith.constant 0.353553385 : f32
    %66 = vector.broadcast %cst_45 : f32 to vector<8x8xf32>
    %67 = arith.mulf %51, %66 : vector<8x8xf32>
    %68 = vector.shape_cast %67 : vector<8x8xf32> to vector<1x8x8xf32>
    %69 = arith.truncf %68 : vector<1x8x8xf32> to vector<1x8x8xbf16>
    %70 = vector.shape_cast %58 : vector<8x8xf32> to vector<1x8x8xf32>
    %71 = arith.truncf %70 : vector<1x8x8xf32> to vector<1x8x8xbf16>
    %72 = vector.shape_cast %65 : vector<8x8xf32> to vector<1x8x8xf32>
    %73 = arith.truncf %72 : vector<1x8x8xf32> to vector<1x8x8xbf16>
    "tpu.trace_start"() <{level = 10 : i32, message = "bqd,bkd->bqk"}> : () -> ()
    %cst_46 = arith.constant dense<0.000000e+00> : vector<1x8x8xf32>
    %74 = tpu.matmul %69, %71, %cst_46 {dimension_numbers = #tpu.dot_dimension_numbers<[2], [2], [1], [1], [0, 0, 0, 1, 1, 1], [0], [0]>} : vector<1x8x8xbf16>, vector<1x8x8xbf16>, vector<1x8x8xf32> -> vector<1x8x8xf32>
    "tpu.trace_stop"() : () -> ()
    %cst_47 = arith.constant dense<0xFF800000> : vector<1x8xf32>
    %75 = vector.multi_reduction <maximumf>, %74, %cst_47 [2] : vector<1x8x8xf32> to vector<1x8xf32>
    %76 = vector.shape_cast %75 : vector<1x8xf32> to vector<1x8x1xf32>
    %77 = vector.broadcast %76 : vector<1x8x1xf32> to vector<1x8x8xf32>
    %78 = arith.subf %74, %77 : vector<1x8x8xf32>
    %79 = math.exp %78 : vector<1x8x8xf32>
    %cst_48 = arith.constant dense<0.000000e+00> : vector<1x8xf32>
    %80 = vector.multi_reduction <add>, %79, %cst_48 [2] : vector<1x8x8xf32> to vector<1x8xf32>
    %81 = vector.shape_cast %80 : vector<1x8xf32> to vector<1x8x1xf32>
    %82 = tpu.reciprocal %81 {approx = true} : vector<1x8x1xf32> -> vector<1x8x1xf32>
    %83 = vector.broadcast %82 : vector<1x8x1xf32> to vector<1x8x8xf32>
    %84 = arith.mulf %79, %83 : vector<1x8x8xf32>
    %85 = arith.truncf %84 : vector<1x8x8xf32> to vector<1x8x8xbf16>
    "tpu.trace_start"() <{level = 10 : i32, message = "bqk,bkd->bqd"}> : () -> ()
    %cst_49 = arith.constant dense<0.000000e+00> : vector<1x8x8xf32>
    %86 = tpu.matmul %85, %73, %cst_49 {dimension_numbers = #tpu.dot_dimension_numbers<[2], [1], [1], [2], [0, 0, 0, 1, 1, 2], [0], [0]>} : vector<1x8x8xbf16>, vector<1x8x8xbf16>, vector<1x8x8xf32> -> vector<1x8x8xf32>
    "tpu.trace_stop"() : () -> ()
    %87 = vector.shape_cast %86 : vector<1x8x8xf32> to vector<8x8xf32>
    %88 = arith.truncf %87 : vector<8x8xf32> to vector<8x8xbf16>
    %89 = vector.extract_strided_slice %37 {offsets = [0, 0, 0], sizes = [1, 8, 32], strides = [1, 1, 1]} : vector<4x8x32xbf16> to vector<1x8x32xbf16>
    %90 = vector.shape_cast %89 : vector<1x8x32xbf16> to vector<8x32xbf16>
    %cst_50 = arith.constant dense<0.000000e+00> : vector<8x32xf32>
    %91 = tpu.matmul %88, %90, %cst_50 {dimension_numbers = #tpu.dot_dimension_numbers<[1], [0], [0], [1], [0, 0, 1, 1], [], []>} : vector<8x8xbf16>, vector<8x32xbf16>, vector<8x32xf32> -> vector<8x32xf32>
    %92 = arith.addf %44, %91 : vector<8x32xf32>
    %93 = vector.extract_strided_slice %31 {offsets = [1, 0, 0], sizes = [1, 32, 8], strides = [1, 1, 1]} : vector<4x32x8xbf16> to vector<1x32x8xbf16>
    %94 = vector.shape_cast %93 : vector<1x32x8xbf16> to vector<32x8xbf16>
    %cst_51 = arith.constant dense<0.000000e+00> : vector<8x8xf32>
    %95 = tpu.matmul %29, %94, %cst_51 {dimension_numbers = #tpu.dot_dimension_numbers<[1], [0], [0], [1], [0, 0, 1, 1], [], []>} : vector<8x32xbf16>, vector<32x8xbf16>, vector<8x8xf32> -> vector<8x8xf32>
    %96 = vector.extract_strided_slice %39 {offsets = [1, 0, 0], sizes = [1, 1, 8], strides = [1, 1, 1]} : vector<4x1x8xf32> to vector<1x1x8xf32>
    %97 = vector.shape_cast %96 : vector<1x1x8xf32> to vector<1x8xf32>
    %98 = vector.broadcast %97 : vector<1x8xf32> to vector<8x8xf32>
    %99 = arith.addf %95, %98 : vector<8x8xf32>
    %100 = vector.extract_strided_slice %33 {offsets = [1, 0, 0], sizes = [1, 32, 8], strides = [1, 1, 1]} : vector<4x32x8xbf16> to vector<1x32x8xbf16>
    %101 = vector.shape_cast %100 : vector<1x32x8xbf16> to vector<32x8xbf16>
    %cst_52 = arith.constant dense<0.000000e+00> : vector<8x8xf32>
    %102 = tpu.matmul %29, %101, %cst_52 {dimension_numbers = #tpu.dot_dimension_numbers<[1], [0], [0], [1], [0, 0, 1, 1], [], []>} : vector<8x32xbf16>, vector<32x8xbf16>, vector<8x8xf32> -> vector<8x8xf32>
    %103 = vector.extract_strided_slice %41 {offsets = [1, 0, 0], sizes = [1, 1, 8], strides = [1, 1, 1]} : vector<4x1x8xf32> to vector<1x1x8xf32>
    %104 = vector.shape_cast %103 : vector<1x1x8xf32> to vector<1x8xf32>
    %105 = vector.broadcast %104 : vector<1x8xf32> to vector<8x8xf32>
    %106 = arith.addf %102, %105 : vector<8x8xf32>
    %107 = vector.extract_strided_slice %35 {offsets = [1, 0, 0], sizes = [1, 32, 8], strides = [1, 1, 1]} : vector<4x32x8xbf16> to vector<1x32x8xbf16>
    %108 = vector.shape_cast %107 : vector<1x32x8xbf16> to vector<32x8xbf16>
    %cst_53 = arith.constant dense<0.000000e+00> : vector<8x8xf32>
    %109 = tpu.matmul %29, %108, %cst_53 {dimension_numbers = #tpu.dot_dimension_numbers<[1], [0], [0], [1], [0, 0, 1, 1], [], []>} : vector<8x32xbf16>, vector<32x8xbf16>, vector<8x8xf32> -> vector<8x8xf32>
    %110 = vector.extract_strided_slice %43 {offsets = [1, 0, 0], sizes = [1, 1, 8], strides = [1, 1, 1]} : vector<4x1x8xf32> to vector<1x1x8xf32>
    %111 = vector.shape_cast %110 : vector<1x1x8xf32> to vector<1x8xf32>
    %112 = vector.broadcast %111 : vector<1x8xf32> to vector<8x8xf32>
    %113 = arith.addf %109, %112 : vector<8x8xf32>
    %cst_54 = arith.constant 0.353553385 : f32
    %114 = vector.broadcast %cst_54 : f32 to vector<8x8xf32>
    %115 = arith.mulf %99, %114 : vector<8x8xf32>
    %116 = vector.shape_cast %115 : vector<8x8xf32> to vector<1x8x8xf32>
    %117 = arith.truncf %116 : vector<1x8x8xf32> to vector<1x8x8xbf16>
    %118 = vector.shape_cast %106 : vector<8x8xf32> to vector<1x8x8xf32>
    %119 = arith.truncf %118 : vector<1x8x8xf32> to vector<1x8x8xbf16>
    %120 = vector.shape_cast %113 : vector<8x8xf32> to vector<1x8x8xf32>
    %121 = arith.truncf %120 : vector<1x8x8xf32> to vector<1x8x8xbf16>
    "tpu.trace_start"() <{level = 10 : i32, message = "bqd,bkd->bqk"}> : () -> ()
    %cst_55 = arith.constant dense<0.000000e+00> : vector<1x8x8xf32>
    %122 = tpu.matmul %117, %119, %cst_55 {dimension_numbers = #tpu.dot_dimension_numbers<[2], [2], [1], [1], [0, 0, 0, 1, 1, 1], [0], [0]>} : vector<1x8x8xbf16>, vector<1x8x8xbf16>, vector<1x8x8xf32> -> vector<1x8x8xf32>
    "tpu.trace_stop"() : () -> ()
    %cst_56 = arith.constant dense<0xFF800000> : vector<1x8xf32>
    %123 = vector.multi_reduction <maximumf>, %122, %cst_56 [2] : vector<1x8x8xf32> to vector<1x8xf32>
    %124 = vector.shape_cast %123 : vector<1x8xf32> to vector<1x8x1xf32>
    %125 = vector.broadcast %124 : vector<1x8x1xf32> to vector<1x8x8xf32>
    %126 = arith.subf %122, %125 : vector<1x8x8xf32>
    %127 = math.exp %126 : vector<1x8x8xf32>
    %cst_57 = arith.constant dense<0.000000e+00> : vector<1x8xf32>
    %128 = vector.multi_reduction <add>, %127, %cst_57 [2] : vector<1x8x8xf32> to vector<1x8xf32>
    %129 = vector.shape_cast %128 : vector<1x8xf32> to vector<1x8x1xf32>
    %130 = tpu.reciprocal %129 {approx = true} : vector<1x8x1xf32> -> vector<1x8x1xf32>
    %131 = vector.broadcast %130 : vector<1x8x1xf32> to vector<1x8x8xf32>
    %132 = arith.mulf %127, %131 : vector<1x8x8xf32>
    %133 = arith.truncf %132 : vector<1x8x8xf32> to vector<1x8x8xbf16>
    "tpu.trace_start"() <{level = 10 : i32, message = "bqk,bkd->bqd"}> : () -> ()
    %cst_58 = arith.constant dense<0.000000e+00> : vector<1x8x8xf32>
    %134 = tpu.matmul %133, %121, %cst_58 {dimension_numbers = #tpu.dot_dimension_numbers<[2], [1], [1], [2], [0, 0, 0, 1, 1, 2], [0], [0]>} : vector<1x8x8xbf16>, vector<1x8x8xbf16>, vector<1x8x8xf32> -> vector<1x8x8xf32>
    "tpu.trace_stop"() : () -> ()
    %135 = vector.shape_cast %134 : vector<1x8x8xf32> to vector<8x8xf32>
    %136 = arith.truncf %135 : vector<8x8xf32> to vector<8x8xbf16>
    %137 = vector.extract_strided_slice %37 {offsets = [1, 0, 0], sizes = [1, 8, 32], strides = [1, 1, 1]} : vector<4x8x32xbf16> to vector<1x8x32xbf16>
    %138 = vector.shape_cast %137 : vector<1x8x32xbf16> to vector<8x32xbf16>
    %cst_59 = arith.constant dense<0.000000e+00> : vector<8x32xf32>
    %139 = tpu.matmul %136, %138, %cst_59 {dimension_numbers = #tpu.dot_dimension_numbers<[1], [0], [0], [1], [0, 0, 1, 1], [], []>} : vector<8x8xbf16>, vector<8x32xbf16>, vector<8x32xf32> -> vector<8x32xf32>
    %140 = arith.addf %92, %139 : vector<8x32xf32>
    %141 = vector.extract_strided_slice %31 {offsets = [2, 0, 0], sizes = [1, 32, 8], strides = [1, 1, 1]} : vector<4x32x8xbf16> to vector<1x32x8xbf16>
    %142 = vector.shape_cast %141 : vector<1x32x8xbf16> to vector<32x8xbf16>
    %cst_60 = arith.constant dense<0.000000e+00> : vector<8x8xf32>
    %143 = tpu.matmul %29, %142, %cst_60 {dimension_numbers = #tpu.dot_dimension_numbers<[1], [0], [0], [1], [0, 0, 1, 1], [], []>} : vector<8x32xbf16>, vector<32x8xbf16>, vector<8x8xf32> -> vector<8x8xf32>
    %144 = vector.extract_strided_slice %39 {offsets = [2, 0, 0], sizes = [1, 1, 8], strides = [1, 1, 1]} : vector<4x1x8xf32> to vector<1x1x8xf32>
    %145 = vector.shape_cast %144 : vector<1x1x8xf32> to vector<1x8xf32>
    %146 = vector.broadcast %145 : vector<1x8xf32> to vector<8x8xf32>
    %147 = arith.addf %143, %146 : vector<8x8xf32>
    %148 = vector.extract_strided_slice %33 {offsets = [2, 0, 0], sizes = [1, 32, 8], strides = [1, 1, 1]} : vector<4x32x8xbf16> to vector<1x32x8xbf16>
    %149 = vector.shape_cast %148 : vector<1x32x8xbf16> to vector<32x8xbf16>
    %cst_61 = arith.constant dense<0.000000e+00> : vector<8x8xf32>
    %150 = tpu.matmul %29, %149, %cst_61 {dimension_numbers = #tpu.dot_dimension_numbers<[1], [0], [0], [1], [0, 0, 1, 1], [], []>} : vector<8x32xbf16>, vector<32x8xbf16>, vector<8x8xf32> -> vector<8x8xf32>
    %151 = vector.extract_strided_slice %41 {offsets = [2, 0, 0], sizes = [1, 1, 8], strides = [1, 1, 1]} : vector<4x1x8xf32> to vector<1x1x8xf32>
    %152 = vector.shape_cast %151 : vector<1x1x8xf32> to vector<1x8xf32>
    %153 = vector.broadcast %152 : vector<1x8xf32> to vector<8x8xf32>
    %154 = arith.addf %150, %153 : vector<8x8xf32>
    %155 = vector.extract_strided_slice %35 {offsets = [2, 0, 0], sizes = [1, 32, 8], strides = [1, 1, 1]} : vector<4x32x8xbf16> to vector<1x32x8xbf16>
    %156 = vector.shape_cast %155 : vector<1x32x8xbf16> to vector<32x8xbf16>
    %cst_62 = arith.constant dense<0.000000e+00> : vector<8x8xf32>
    %157 = tpu.matmul %29, %156, %cst_62 {dimension_numbers = #tpu.dot_dimension_numbers<[1], [0], [0], [1], [0, 0, 1, 1], [], []>} : vector<8x32xbf16>, vector<32x8xbf16>, vector<8x8xf32> -> vector<8x8xf32>
    %158 = vector.extract_strided_slice %43 {offsets = [2, 0, 0], sizes = [1, 1, 8], strides = [1, 1, 1]} : vector<4x1x8xf32> to vector<1x1x8xf32>
    %159 = vector.shape_cast %158 : vector<1x1x8xf32> to vector<1x8xf32>
    %160 = vector.broadcast %159 : vector<1x8xf32> to vector<8x8xf32>
    %161 = arith.addf %157, %160 : vector<8x8xf32>
    %cst_63 = arith.constant 0.353553385 : f32
    %162 = vector.broadcast %cst_63 : f32 to vector<8x8xf32>
    %163 = arith.mulf %147, %162 : vector<8x8xf32>
    %164 = vector.shape_cast %163 : vector<8x8xf32> to vector<1x8x8xf32>
    %165 = arith.truncf %164 : vector<1x8x8xf32> to vector<1x8x8xbf16>
    %166 = vector.shape_cast %154 : vector<8x8xf32> to vector<1x8x8xf32>
    %167 = arith.truncf %166 : vector<1x8x8xf32> to vector<1x8x8xbf16>
    %168 = vector.shape_cast %161 : vector<8x8xf32> to vector<1x8x8xf32>
    %169 = arith.truncf %168 : vector<1x8x8xf32> to vector<1x8x8xbf16>
    "tpu.trace_start"() <{level = 10 : i32, message = "bqd,bkd->bqk"}> : () -> ()
    %cst_64 = arith.constant dense<0.000000e+00> : vector<1x8x8xf32>
    %170 = tpu.matmul %165, %167, %cst_64 {dimension_numbers = #tpu.dot_dimension_numbers<[2], [2], [1], [1], [0, 0, 0, 1, 1, 1], [0], [0]>} : vector<1x8x8xbf16>, vector<1x8x8xbf16>, vector<1x8x8xf32> -> vector<1x8x8xf32>
    "tpu.trace_stop"() : () -> ()
    %cst_65 = arith.constant dense<0xFF800000> : vector<1x8xf32>
    %171 = vector.multi_reduction <maximumf>, %170, %cst_65 [2] : vector<1x8x8xf32> to vector<1x8xf32>
    %172 = vector.shape_cast %171 : vector<1x8xf32> to vector<1x8x1xf32>
    %173 = vector.broadcast %172 : vector<1x8x1xf32> to vector<1x8x8xf32>
    %174 = arith.subf %170, %173 : vector<1x8x8xf32>
    %175 = math.exp %174 : vector<1x8x8xf32>
    %cst_66 = arith.constant dense<0.000000e+00> : vector<1x8xf32>
    %176 = vector.multi_reduction <add>, %175, %cst_66 [2] : vector<1x8x8xf32> to vector<1x8xf32>
    %177 = vector.shape_cast %176 : vector<1x8xf32> to vector<1x8x1xf32>
    %178 = tpu.reciprocal %177 {approx = true} : vector<1x8x1xf32> -> vector<1x8x1xf32>
    %179 = vector.broadcast %178 : vector<1x8x1xf32> to vector<1x8x8xf32>
    %180 = arith.mulf %175, %179 : vector<1x8x8xf32>
    %181 = arith.truncf %180 : vector<1x8x8xf32> to vector<1x8x8xbf16>
    "tpu.trace_start"() <{level = 10 : i32, message = "bqk,bkd->bqd"}> : () -> ()
    %cst_67 = arith.constant dense<0.000000e+00> : vector<1x8x8xf32>
    %182 = tpu.matmul %181, %169, %cst_67 {dimension_numbers = #tpu.dot_dimension_numbers<[2], [1], [1], [2], [0, 0, 0, 1, 1, 2], [0], [0]>} : vector<1x8x8xbf16>, vector<1x8x8xbf16>, vector<1x8x8xf32> -> vector<1x8x8xf32>
    "tpu.trace_stop"() : () -> ()
    %183 = vector.shape_cast %182 : vector<1x8x8xf32> to vector<8x8xf32>
    %184 = arith.truncf %183 : vector<8x8xf32> to vector<8x8xbf16>
    %185 = vector.extract_strided_slice %37 {offsets = [2, 0, 0], sizes = [1, 8, 32], strides = [1, 1, 1]} : vector<4x8x32xbf16> to vector<1x8x32xbf16>
    %186 = vector.shape_cast %185 : vector<1x8x32xbf16> to vector<8x32xbf16>
    %cst_68 = arith.constant dense<0.000000e+00> : vector<8x32xf32>
    %187 = tpu.matmul %184, %186, %cst_68 {dimension_numbers = #tpu.dot_dimension_numbers<[1], [0], [0], [1], [0, 0, 1, 1], [], []>} : vector<8x8xbf16>, vector<8x32xbf16>, vector<8x32xf32> -> vector<8x32xf32>
    %188 = arith.addf %140, %187 : vector<8x32xf32>
    %189 = vector.extract_strided_slice %31 {offsets = [3, 0, 0], sizes = [1, 32, 8], strides = [1, 1, 1]} : vector<4x32x8xbf16> to vector<1x32x8xbf16>
    %190 = vector.shape_cast %189 : vector<1x32x8xbf16> to vector<32x8xbf16>
    %cst_69 = arith.constant dense<0.000000e+00> : vector<8x8xf32>
    %191 = tpu.matmul %29, %190, %cst_69 {dimension_numbers = #tpu.dot_dimension_numbers<[1], [0], [0], [1], [0, 0, 1, 1], [], []>} : vector<8x32xbf16>, vector<32x8xbf16>, vector<8x8xf32> -> vector<8x8xf32>
    %192 = vector.extract_strided_slice %39 {offsets = [3, 0, 0], sizes = [1, 1, 8], strides = [1, 1, 1]} : vector<4x1x8xf32> to vector<1x1x8xf32>
    %193 = vector.shape_cast %192 : vector<1x1x8xf32> to vector<1x8xf32>
    %194 = vector.broadcast %193 : vector<1x8xf32> to vector<8x8xf32>
    %195 = arith.addf %191, %194 : vector<8x8xf32>
    %196 = vector.extract_strided_slice %33 {offsets = [3, 0, 0], sizes = [1, 32, 8], strides = [1, 1, 1]} : vector<4x32x8xbf16> to vector<1x32x8xbf16>
    %197 = vector.shape_cast %196 : vector<1x32x8xbf16> to vector<32x8xbf16>
    %cst_70 = arith.constant dense<0.000000e+00> : vector<8x8xf32>
    %198 = tpu.matmul %29, %197, %cst_70 {dimension_numbers = #tpu.dot_dimension_numbers<[1], [0], [0], [1], [0, 0, 1, 1], [], []>} : vector<8x32xbf16>, vector<32x8xbf16>, vector<8x8xf32> -> vector<8x8xf32>
    %199 = vector.extract_strided_slice %41 {offsets = [3, 0, 0], sizes = [1, 1, 8], strides = [1, 1, 1]} : vector<4x1x8xf32> to vector<1x1x8xf32>
    %200 = vector.shape_cast %199 : vector<1x1x8xf32> to vector<1x8xf32>
    %201 = vector.broadcast %200 : vector<1x8xf32> to vector<8x8xf32>
    %202 = arith.addf %198, %201 : vector<8x8xf32>
    %203 = vector.extract_strided_slice %35 {offsets = [3, 0, 0], sizes = [1, 32, 8], strides = [1, 1, 1]} : vector<4x32x8xbf16> to vector<1x32x8xbf16>
    %204 = vector.shape_cast %203 : vector<1x32x8xbf16> to vector<32x8xbf16>
    %cst_71 = arith.constant dense<0.000000e+00> : vector<8x8xf32>
    %205 = tpu.matmul %29, %204, %cst_71 {dimension_numbers = #tpu.dot_dimension_numbers<[1], [0], [0], [1], [0, 0, 1, 1], [], []>} : vector<8x32xbf16>, vector<32x8xbf16>, vector<8x8xf32> -> vector<8x8xf32>
    %206 = vector.extract_strided_slice %43 {offsets = [3, 0, 0], sizes = [1, 1, 8], strides = [1, 1, 1]} : vector<4x1x8xf32> to vector<1x1x8xf32>
    %207 = vector.shape_cast %206 : vector<1x1x8xf32> to vector<1x8xf32>
    %208 = vector.broadcast %207 : vector<1x8xf32> to vector<8x8xf32>
    %209 = arith.addf %205, %208 : vector<8x8xf32>
    %cst_72 = arith.constant 0.353553385 : f32
    %210 = vector.broadcast %cst_72 : f32 to vector<8x8xf32>
    %211 = arith.mulf %195, %210 : vector<8x8xf32>
    %212 = vector.shape_cast %211 : vector<8x8xf32> to vector<1x8x8xf32>
    %213 = arith.truncf %212 : vector<1x8x8xf32> to vector<1x8x8xbf16>
    %214 = vector.shape_cast %202 : vector<8x8xf32> to vector<1x8x8xf32>
    %215 = arith.truncf %214 : vector<1x8x8xf32> to vector<1x8x8xbf16>
    %216 = vector.shape_cast %209 : vector<8x8xf32> to vector<1x8x8xf32>
    %217 = arith.truncf %216 : vector<1x8x8xf32> to vector<1x8x8xbf16>
    "tpu.trace_start"() <{level = 10 : i32, message = "bqd,bkd->bqk"}> : () -> ()
    %cst_73 = arith.constant dense<0.000000e+00> : vector<1x8x8xf32>
    %218 = tpu.matmul %213, %215, %cst_73 {dimension_numbers = #tpu.dot_dimension_numbers<[2], [2], [1], [1], [0, 0, 0, 1, 1, 1], [0], [0]>} : vector<1x8x8xbf16>, vector<1x8x8xbf16>, vector<1x8x8xf32> -> vector<1x8x8xf32>
    "tpu.trace_stop"() : () -> ()
    %cst_74 = arith.constant dense<0xFF800000> : vector<1x8xf32>
    %219 = vector.multi_reduction <maximumf>, %218, %cst_74 [2] : vector<1x8x8xf32> to vector<1x8xf32>
    %220 = vector.shape_cast %219 : vector<1x8xf32> to vector<1x8x1xf32>
    %221 = vector.broadcast %220 : vector<1x8x1xf32> to vector<1x8x8xf32>
    %222 = arith.subf %218, %221 : vector<1x8x8xf32>
    %223 = math.exp %222 : vector<1x8x8xf32>
    %cst_75 = arith.constant dense<0.000000e+00> : vector<1x8xf32>
    %224 = vector.multi_reduction <add>, %223, %cst_75 [2] : vector<1x8x8xf32> to vector<1x8xf32>
    %225 = vector.shape_cast %224 : vector<1x8xf32> to vector<1x8x1xf32>
    %226 = tpu.reciprocal %225 {approx = true} : vector<1x8x1xf32> -> vector<1x8x1xf32>
    %227 = vector.broadcast %226 : vector<1x8x1xf32> to vector<1x8x8xf32>
    %228 = arith.mulf %223, %227 : vector<1x8x8xf32>
    %229 = arith.truncf %228 : vector<1x8x8xf32> to vector<1x8x8xbf16>
    "tpu.trace_start"() <{level = 10 : i32, message = "bqk,bkd->bqd"}> : () -> ()
    %cst_76 = arith.constant dense<0.000000e+00> : vector<1x8x8xf32>
    %230 = tpu.matmul %229, %217, %cst_76 {dimension_numbers = #tpu.dot_dimension_numbers<[2], [1], [1], [2], [0, 0, 0, 1, 1, 2], [0], [0]>} : vector<1x8x8xbf16>, vector<1x8x8xbf16>, vector<1x8x8xf32> -> vector<1x8x8xf32>
    "tpu.trace_stop"() : () -> ()
    %231 = vector.shape_cast %230 : vector<1x8x8xf32> to vector<8x8xf32>
    %232 = arith.truncf %231 : vector<8x8xf32> to vector<8x8xbf16>
    %233 = vector.extract_strided_slice %37 {offsets = [3, 0, 0], sizes = [1, 8, 32], strides = [1, 1, 1]} : vector<4x8x32xbf16> to vector<1x8x32xbf16>
    %234 = vector.shape_cast %233 : vector<1x8x32xbf16> to vector<8x32xbf16>
    %cst_77 = arith.constant dense<0.000000e+00> : vector<8x32xf32>
    %235 = tpu.matmul %232, %234, %cst_77 {dimension_numbers = #tpu.dot_dimension_numbers<[1], [0], [0], [1], [0, 0, 1, 1], [], []>} : vector<8x8xbf16>, vector<8x32xbf16>, vector<8x32xf32> -> vector<8x32xf32>
    %236 = arith.addf %188, %235 : vector<8x32xf32>
    %237 = arith.addf %4, %236 : vector<8x32xf32>
    %c0_78 = arith.constant 0 : index
    %c0_79 = arith.constant 0 : index
    %c0_80 = arith.constant 0 : index
    %238 = vector.load %arg15[%c0_78, %c0_79, %c0_80] : memref<1x1x32xf32, #tpu.memory_space<vmem>>, vector<1x1x32xf32>
    %239 = vector.shape_cast %238 : vector<1x1x32xf32> to vector<1x32xf32>
    %240 = vector.broadcast %239 : vector<1x32xf32> to vector<8x32xf32>
    %241 = arith.addf %237, %240 : vector<8x32xf32>
    %c0_81 = arith.constant 0 : index
    %c0_82 = arith.constant 0 : index
    %c0_83 = arith.constant 0 : index
    %242 = vector.load %arg16[%c0_81, %c0_82, %c0_83] : memref<1x1x32xf32, #tpu.memory_space<vmem>>, vector<1x1x32xf32>
    %243 = vector.shape_cast %242 : vector<1x1x32xf32> to vector<1x32xf32>
    %c0_84 = arith.constant 0 : index
    %c0_85 = arith.constant 0 : index
    %c0_86 = arith.constant 0 : index
    %244 = vector.load %arg17[%c0_84, %c0_85, %c0_86] : memref<1x1x32xf32, #tpu.memory_space<vmem>>, vector<1x1x32xf32>
    %245 = vector.shape_cast %244 : vector<1x1x32xf32> to vector<1x32xf32>
    %cst_87 = arith.constant dense<0.000000e+00> : vector<8xf32>
    %246 = vector.multi_reduction <add>, %241, %cst_87 [1] : vector<8x32xf32> to vector<8xf32>
    %247 = vector.shape_cast %246 : vector<8xf32> to vector<8x1xf32>
    %cst_88 = arith.constant 3.200000e+01 : f32
    %248 = vector.broadcast %cst_88 : f32 to vector<8x1xf32>
    %249 = arith.divf %247, %248 : vector<8x1xf32>
    %250 = vector.broadcast %249 : vector<8x1xf32> to vector<8x32xf32>
    %251 = arith.subf %241, %250 : vector<8x32xf32>
    %252 = arith.mulf %251, %251 : vector<8x32xf32>
    %cst_89 = arith.constant dense<0.000000e+00> : vector<8xf32>
    %253 = vector.multi_reduction <add>, %252, %cst_89 [1] : vector<8x32xf32> to vector<8xf32>
    %254 = vector.shape_cast %253 : vector<8xf32> to vector<8x1xf32>
    %cst_90 = arith.constant 3.200000e+01 : f32
    %255 = vector.broadcast %cst_90 : f32 to vector<8x1xf32>
    %256 = arith.divf %254, %255 : vector<8x1xf32>
    %cst_91 = arith.constant 9.99999997E-7 : f32
    %257 = vector.broadcast %cst_91 : f32 to vector<8x1xf32>
    %258 = arith.addf %256, %257 : vector<8x1xf32>
    %259 = math.rsqrt %258 : vector<8x1xf32>
    %260 = vector.broadcast %259 : vector<8x1xf32> to vector<8x32xf32>
    %261 = arith.mulf %251, %260 : vector<8x32xf32>
    %262 = vector.broadcast %243 : vector<1x32xf32> to vector<8x32xf32>
    %263 = arith.mulf %261, %262 : vector<8x32xf32>
    %264 = vector.broadcast %245 : vector<1x32xf32> to vector<8x32xf32>
    %265 = arith.addf %263, %264 : vector<8x32xf32>
    %266 = arith.truncf %265 : vector<8x32xf32> to vector<8x32xbf16>
    %c0_92 = arith.constant 0 : index
    %c0_93 = arith.constant 0 : index
    %c0_94 = arith.constant 0 : index
    %267 = vector.load %arg18[%c0_92, %c0_93, %c0_94] : memref<1x32x128xbf16, #tpu.memory_space<vmem>>, vector<1x32x128xbf16>
    %268 = vector.shape_cast %267 : vector<1x32x128xbf16> to vector<32x128xbf16>
    %cst_95 = arith.constant dense<0.000000e+00> : vector<8x128xf32>
    %269 = tpu.matmul %266, %268, %cst_95 {dimension_numbers = #tpu.dot_dimension_numbers<[1], [0], [0], [1], [0, 0, 1, 1], [], []>} : vector<8x32xbf16>, vector<32x128xbf16>, vector<8x128xf32> -> vector<8x128xf32>
    %c0_96 = arith.constant 0 : index
    %c0_97 = arith.constant 0 : index
    %c0_98 = arith.constant 0 : index
    %270 = vector.load %arg19[%c0_96, %c0_97, %c0_98] : memref<1x1x128xf32, #tpu.memory_space<vmem>>, vector<1x1x128xf32>
    %271 = vector.shape_cast %270 : vector<1x1x128xf32> to vector<1x128xf32>
    %272 = vector.broadcast %271 : vector<1x128xf32> to vector<8x128xf32>
    %273 = arith.addf %269, %272 : vector<8x128xf32>
    %274 = arith.mulf %273, %273 : vector<8x128xf32>
    %275 = arith.mulf %273, %274 : vector<8x128xf32>
    %cst_99 = arith.constant 4.471500e-02 : f32
    %276 = vector.broadcast %cst_99 : f32 to vector<8x128xf32>
    %277 = arith.mulf %276, %275 : vector<8x128xf32>
    %278 = arith.addf %273, %277 : vector<8x128xf32>
    %cst_100 = arith.constant 0.797884583 : f32
    %279 = vector.broadcast %cst_100 : f32 to vector<8x128xf32>
    %280 = arith.mulf %279, %278 : vector<8x128xf32>
    %281 = math.tanh %280 : vector<8x128xf32>
    %cst_101 = arith.constant 1.000000e+00 : f32
    %282 = vector.broadcast %cst_101 : f32 to vector<8x128xf32>
    %283 = arith.addf %282, %281 : vector<8x128xf32>
    %cst_102 = arith.constant 5.000000e-01 : f32
    %284 = vector.broadcast %cst_102 : f32 to vector<8x128xf32>
    %285 = arith.mulf %284, %283 : vector<8x128xf32>
    %286 = arith.mulf %273, %285 : vector<8x128xf32>
    %287 = arith.truncf %286 : vector<8x128xf32> to vector<8x128xbf16>
    %c0_103 = arith.constant 0 : index
    %c0_104 = arith.constant 0 : index
    %c0_105 = arith.constant 0 : index
    %288 = vector.load %arg20[%c0_103, %c0_104, %c0_105] : memref<1x128x32xbf16, #tpu.memory_space<vmem>>, vector<1x128x32xbf16>
    %289 = vector.shape_cast %288 : vector<1x128x32xbf16> to vector<128x32xbf16>
    %cst_106 = arith.constant dense<0.000000e+00> : vector<8x32xf32>
    %290 = tpu.matmul %287, %289, %cst_106 {dimension_numbers = #tpu.dot_dimension_numbers<[1], [0], [0], [1], [0, 0, 1, 1], [], []>} : vector<8x128xbf16>, vector<128x32xbf16>, vector<8x32xf32> -> vector<8x32xf32>
    %c0_107 = arith.constant 0 : index
    %c0_108 = arith.constant 0 : index
    %c0_109 = arith.constant 0 : index
    %291 = vector.load %arg21[%c0_107, %c0_108, %c0_109] : memref<1x1x32xf32, #tpu.memory_space<vmem>>, vector<1x1x32xf32>
    %292 = vector.shape_cast %291 : vector<1x1x32xf32> to vector<1x32xf32>
    %293 = vector.broadcast %292 : vector<1x32xf32> to vector<8x32xf32>
    %294 = arith.addf %290, %293 : vector<8x32xf32>
    %295 = arith.addf %241, %294 : vector<8x32xf32>
    %296 = vector.shape_cast %295 : vector<8x32xf32> to vector<1x8x32xf32>
    %c0_110 = arith.constant 0 : index
    %c0_111 = arith.constant 0 : index
    %c0_112 = arith.constant 0 : index
    %297 = vector.load %arg25[%c0_110, %c0_111, %c0_112] : memref<1x8x32xf32, #tpu.memory_space<vmem>>, vector<1x8x32xf32>
    tpu.vector_store %arg25[%c0_110, %c0_111, %c0_112], %296 {strides = array<i32>} : memref<1x8x32xf32, #tpu.memory_space<vmem>>, vector<1x8x32xf32>,
    %c1_i32 = arith.constant 1 : i32
    %298 = arith.cmpi eq, %arg1, %c1_i32 : i32
    %299 = arith.extui %298 : i1 to i32
    %c0_i32_113 = arith.constant 0 : i32
    %300 = arith.cmpi ne, %299, %c0_i32_113 : i32
    scf.if %300 {
      %c0_114 = arith.constant 0 : index
      %c0_115 = arith.constant 0 : index
      %301 = vector.load %arg22[%c0_114, %c0_115] : memref<1x32xf32, #tpu.memory_space<vmem>>, vector<1x32xf32>
      %c0_116 = arith.constant 0 : index
      %c0_117 = arith.constant 0 : index
      %302 = vector.load %arg23[%c0_116, %c0_117] : memref<1x32xf32, #tpu.memory_space<vmem>>, vector<1x32xf32>
      %cst_118 = arith.constant dense<0.000000e+00> : vector<8xf32>
      %303 = vector.multi_reduction <add>, %295, %cst_118 [1] : vector<8x32xf32> to vector<8xf32>
      %304 = vector.shape_cast %303 : vector<8xf32> to vector<8x1xf32>
      %cst_119 = arith.constant 3.200000e+01 : f32
      %305 = vector.broadcast %cst_119 : f32 to vector<8x1xf32>
      %306 = arith.divf %304, %305 : vector<8x1xf32>
      %307 = vector.broadcast %306 : vector<8x1xf32> to vector<8x32xf32>
      %308 = arith.subf %295, %307 : vector<8x32xf32>
      %309 = arith.mulf %308, %308 : vector<8x32xf32>
      %cst_120 = arith.constant dense<0.000000e+00> : vector<8xf32>
      %310 = vector.multi_reduction <add>, %309, %cst_120 [1] : vector<8x32xf32> to vector<8xf32>
      %311 = vector.shape_cast %310 : vector<8xf32> to vector<8x1xf32>
      %cst_121 = arith.constant 3.200000e+01 : f32
      %312 = vector.broadcast %cst_121 : f32 to vector<8x1xf32>
      %313 = arith.divf %311, %312 : vector<8x1xf32>
      %cst_122 = arith.constant 9.99999997E-7 : f32
      %314 = vector.broadcast %cst_122 : f32 to vector<8x1xf32>
      %315 = arith.addf %313, %314 : vector<8x1xf32>
      %316 = math.rsqrt %315 : vector<8x1xf32>
      %317 = vector.broadcast %316 : vector<8x1xf32> to vector<8x32xf32>
      %318 = arith.mulf %308, %317 : vector<8x32xf32>
      %319 = vector.broadcast %301 : vector<1x32xf32> to vector<8x32xf32>
      %320 = arith.mulf %318, %319 : vector<8x32xf32>
      %321 = vector.broadcast %302 : vector<1x32xf32> to vector<8x32xf32>
      %322 = arith.addf %320, %321 : vector<8x32xf32>
      %323 = vector.shape_cast %322 : vector<8x32xf32> to vector<1x8x32xf32>
      %c0_123 = arith.constant 0 : index
      %c0_124 = arith.constant 0 : index
      %c0_125 = arith.constant 0 : index
      %324 = vector.load %arg24[%c0_123, %c0_124, %c0_125] : memref<1x8x32xf32, #tpu.memory_space<vmem>>, vector<1x8x32xf32>
      tpu.vector_store %arg24[%c0_123, %c0_124, %c0_125], %323 {strides = array<i32>} : memref<1x8x32xf32, #tpu.memory_space<vmem>>, vector<1x8x32xf32>,
    } else {
    }
    return
  }
  func.func @transform_0(%arg0: i32, %arg1: i32) -> (i32, i32, i32) {
    %c0_i32 = arith.constant 0 : i32
    %c0_i32_0 = arith.constant 0 : i32
    %c0_i32_1 = arith.constant 0 : i32
    return %arg0, %c0_i32, %c0_i32_0 : i32, i32, i32
  }
  func.func @transform_1(%arg0: i32, %arg1: i32) -> (i32, i32) {
    %c0_i32 = arith.constant 0 : i32
    %c0_i32_0 = arith.constant 0 : i32
    %c0_i32_1 = arith.constant 0 : i32
    return %c0_i32, %c0_i32_0 : i32, i32
  }
  func.func @transform_2(%arg0: i32, %arg1: i32) -> (i32, i32) {
    %c0_i32 = arith.constant 0 : i32
    %c0_i32_0 = arith.constant 0 : i32
    %c0_i32_1 = arith.constant 0 : i32
    return %c0_i32, %c0_i32_0 : i32, i32
  }
  func.func @transform_3(%arg0: i32, %arg1: i32) -> (i32, i32) {
    %c0_i32 = arith.constant 0 : i32
    %c0_i32_0 = arith.constant 0 : i32
    %c0_i32_1 = arith.constant 0 : i32
    return %c0_i32, %c0_i32_0 : i32, i32
  }
  func.func @transform_4(%arg0: i32, %arg1: i32) -> (i32, i32, i32) {
    %c0_i32 = arith.constant 0 : i32
    %c0_i32_0 = arith.constant 0 : i32
    %c0_i32_1 = arith.constant 0 : i32
    return %arg1, %c0_i32, %c0_i32_0 : i32, i32, i32
  }
  func.func @transform_5(%arg0: i32, %arg1: i32) -> (i32, i32, i32) {
    %c0_i32 = arith.constant 0 : i32
    %c0_i32_0 = arith.constant 0 : i32
    %c0_i32_1 = arith.constant 0 : i32
    return %arg1, %c0_i32, %c0_i32_0 : i32, i32, i32
  }
  func.func @transform_6(%arg0: i32, %arg1: i32) -> (i32, i32, i32, i32) {
    %c0_i32 = arith.constant 0 : i32
    %c0_i32_0 = arith.constant 0 : i32
    %c0_i32_1 = arith.constant 0 : i32
    %c0_i32_2 = arith.constant 0 : i32
    return %arg1, %c0_i32, %c0_i32_0, %c0_i32_1 : i32, i32, i32, i32
  }
  func.func @transform_7(%arg0: i32, %arg1: i32) -> (i32, i32, i32, i32) {
    %c0_i32 = arith.constant 0 : i32
    %c0_i32_0 = arith.constant 0 : i32
    %c0_i32_1 = arith.constant 0 : i32
    %c0_i32_2 = arith.constant 0 : i32
    return %arg1, %c0_i32, %c0_i32_0, %c0_i32_1 : i32, i32, i32, i32
  }
  func.func @transform_8(%arg0: i32, %arg1: i32) -> (i32, i32, i32, i32) {
    %c0_i32 = arith.constant 0 : i32
    %c0_i32_0 = arith.constant 0 : i32
    %c0_i32_1 = arith.constant 0 : i32
    %c0_i32_2 = arith.constant 0 : i32
    return %arg1, %c0_i32, %c0_i32_0, %c0_i32_1 : i32, i32, i32, i32
  }
  func.func @transform_9(%arg0: i32, %arg1: i32) -> (i32, i32, i32, i32) {
    %c0_i32 = arith.constant 0 : i32
    %c0_i32_0 = arith.constant 0 : i32
    %c0_i32_1 = arith.constant 0 : i32
    %c0_i32_2 = arith.constant 0 : i32
    return %arg1, %c0_i32, %c0_i32_0, %c0_i32_1 : i32, i32, i32, i32
  }
  func.func @transform_10(%arg0: i32, %arg1: i32) -> (i32, i32, i32, i32) {
    %c0_i32 = arith.constant 0 : i32
    %c0_i32_0 = arith.constant 0 : i32
    %c0_i32_1 = arith.constant 0 : i32
    %c0_i32_2 = arith.constant 0 : i32
    return %arg1, %c0_i32, %c0_i32_0, %c0_i32_1 : i32, i32, i32, i32
  }
  func.func @transform_11(%arg0: i32, %arg1: i32) -> (i32, i32, i32, i32) {
    %c0_i32 = arith.constant 0 : i32
    %c0_i32_0 = arith.constant 0 : i32
    %c0_i32_1 = arith.constant 0 : i32
    %c0_i32_2 = arith.constant 0 : i32
    return %arg1, %c0_i32, %c0_i32_0, %c0_i32_1 : i32, i32, i32, i32
  }
  func.func @transform_12(%arg0: i32, %arg1: i32) -> (i32, i32, i32, i32) {
    %c0_i32 = arith.constant 0 : i32
    %c0_i32_0 = arith.constant 0 : i32
    %c0_i32_1 = arith.constant 0 : i32
    %c0_i32_2 = arith.constant 0 : i32
    return %arg1, %c0_i32, %c0_i32_0, %c0_i32_1 : i32, i32, i32, i32
  }
  func.func @transform_13(%arg0: i32, %arg1: i32) -> (i32, i32, i32) {
    %c0_i32 = arith.constant 0 : i32
    %c0_i32_0 = arith.constant 0 : i32
    %c0_i32_1 = arith.constant 0 : i32
    return %arg1, %c0_i32, %c0_i32_0 : i32, i32, i32
  }
  func.func @transform_14(%arg0: i32, %arg1: i32) -> (i32, i32, i32) {
    %c0_i32 = arith.constant 0 : i32
    %c0_i32_0 = arith.constant 0 : i32
    %c0_i32_1 = arith.constant 0 : i32
    return %arg1, %c0_i32, %c0_i32_0 : i32, i32, i32
  }
  func.func @transform_15(%arg0: i32, %arg1: i32) -> (i32, i32, i32) {
    %c0_i32 = arith.constant 0 : i32
    %c0_i32_0 = arith.constant 0 : i32
    %c0_i32_1 = arith.constant 0 : i32
    return %arg1, %c0_i32, %c0_i32_0 : i32, i32, i32
  }
  func.func @transform_16(%arg0: i32, %arg1: i32) -> (i32, i32, i32) {
    %c0_i32 = arith.constant 0 : i32
    %c0_i32_0 = arith.constant 0 : i32
    %c0_i32_1 = arith.constant 0 : i32
    return %arg1, %c0_i32, %c0_i32_0 : i32, i32, i32
  }
  func.func @transform_17(%arg0: i32, %arg1: i32) -> (i32, i32, i32) {
    %c0_i32 = arith.constant 0 : i32
    %c0_i32_0 = arith.constant 0 : i32
    %c0_i32_1 = arith.constant 0 : i32
    return %arg1, %c0_i32, %c0_i32_0 : i32, i32, i32
  }
  func.func @transform_18(%arg0: i32, %arg1: i32) -> (i32, i32, i32) {
    %c0_i32 = arith.constant 0 : i32
    %c0_i32_0 = arith.constant 0 : i32
    %c0_i32_1 = arith.constant 0 : i32
    return %arg1, %c0_i32, %c0_i32_0 : i32, i32, i32
  }
  func.func @transform_19(%arg0: i32, %arg1: i32) -> (i32, i32, i32) {
    %c0_i32 = arith.constant 0 : i32
    %c0_i32_0 = arith.constant 0 : i32
    %c0_i32_1 = arith.constant 0 : i32
    return %arg1, %c0_i32, %c0_i32_0 : i32, i32, i32
  }
  func.func @transform_20(%arg0: i32, %arg1: i32) -> (i32, i32) {
    %c0_i32 = arith.constant 0 : i32
    %c0_i32_0 = arith.constant 0 : i32
    %c0_i32_1 = arith.constant 0 : i32
    return %c0_i32, %c0_i32_0 : i32, i32
  }
  func.func @transform_21(%arg0: i32, %arg1: i32) -> (i32, i32) {
    %c0_i32 = arith.constant 0 : i32
    %c0_i32_0 = arith.constant 0 : i32
    %c0_i32_1 = arith.constant 0 : i32
    return %c0_i32, %c0_i32_0 : i32, i32
  }
  func.func @transform_22(%arg0: i32, %arg1: i32) -> (i32, i32, i32) {
    %c0_i32 = arith.constant 0 : i32
    %c0_i32_0 = arith.constant 0 : i32
    %c0_i32_1 = arith.constant 0 : i32
    return %arg0, %c0_i32, %c0_i32_0 : i32, i32, i32
  }
}

</mosaic_0001>

<bundles_post_ra>
// kernel: tpu_custom_call.1
= control target key start
LH: loop header
LB: loop body
LE: loop exit
PB: predicated region body
PF: predicated region fallthrough
CT: control target
= control target key end

     0   :  { %s4312_s0 = inlined_call_operand.vmem [shape: f32[2,8,128], index: 0, kind: input, shape index: {}]   ;;  %s4313_s1 = inlined_call_operand.vmem [shape: bf16[128,32], index: 1, kind: input, shape index: {}]   ;;  %s4314_s2 = inlined_call_operand.vmem [shape: f32[1,32], index: 2, kind: input, shape index: {}]   ;;  %s4315_s3 = inlined_call_operand.vmem [shape: f32[8,32], index: 3, kind: input, shape index: {}]   ;;  %s4316_s4 = inlined_call_operand.vmem [shape: f32[2,1,32], index: 4, kind: input, shape index: {}]   ;;  %s4317_s5 = inlined_call_operand.vmem [shape: f32[2,1,32], index: 5, kind: input, shape index: {}]   ;;  %s4318_s6 = inlined_call_operand.vmem [shape: bf16[2,4,32,8], index: 6, kind: input, shape index: {}]   ;;  %s4319_s7 = inlined_call_operand.vmem [shape: f32[2,4,1,8], index: 7, kind: input, shape index: {}]   ;;  %s4320_s8 = inlined_call_operand.vmem [shape: bf16[2,4,32,8], index: 8, kind: input, shape index: {}]   ;;  %s4321_s9 = inlined_call_operand.vmem [shape: f32[2,4,1,8], index: 9, kind: input, shape index: {}]   ;;  %s4322_s10 = inlined_call_operand.vmem [shape: bf16[2,4,32,8], index: 10, kind: input, shape index: {}]   ;;  %s4323_s11 = inlined_call_operand.vmem [shape: f32[2,4,1,8], index: 11, kind: input, shape index: {}]   ;;  %s4324_s12 = inlined_call_operand.vmem [shape: bf16[2,4,8,32], index: 12, kind: input, shape index: {}]   ;;  %s4325_s13 = inlined_call_operand.vmem [shape: f32[2,1,32], index: 13, kind: input, shape index: {}]   ;;  %s4326_s14 = inlined_call_operand.vmem [shape: f32[2,1,32], index: 14, kind: input, shape index: {}]   ;;  %s4327_s15 = inlined_call_operand.vmem [shape: f32[2,1,32], index: 15, kind: input, shape index: {}]   ;;  %s4328_s16 = inlined_call_operand.vmem [shape: bf16[2,32,128], index: 16, kind: input, shape index: {}]   ;;  %s4329_s17 = inlined_call_operand.vmem [shape: f32[2,1,128], index: 17, kind: input, shape index: {}]   ;;  %s4330_s18 = inlined_call_operand.vmem [shape: bf16[2,128,32], index: 18, kind: input, shape index: {}]   ;;  %s4331_s19 = inlined_call_operand.vmem [shape: f32[2,1,32], index: 19, kind: input, shape index: {}]   ;;  %s4332_s20 = inlined_call_operand.vmem [shape: f32[1,32], index: 20, kind: input, shape index: {}]   ;;  %s4333_s21 = inlined_call_operand.vmem [shape: f32[1,32], index: 21, kind: input, shape index: {}]   ;;  %s4334_s22 = inlined_call_operand.hbm [shape: f32[2,8,32], index: 22, kind: output, shape index: {}]  }
   0x1   :  { %4353 = sst [smem:[#allocation21_spill]] %s4312_s0 }
   0x2   :  { %4354 = sst [smem:[#allocation22_spill]] %s4313_s1 }
   0x3   :  { %4355 = sst [smem:[#allocation23_spill]] %s4314_s2 }
   0x4   :  { %4356 = sst [smem:[#allocation24_spill]] %s4315_s3 }
   0x5   :  { %4357 = sst [smem:[#allocation25_spill]] %s4316_s4 }
   0x6   :  { %4358 = sst [smem:[#allocation26_spill]] %s4317_s5 }
   0x7   :  { %4359 = sst [smem:[#allocation27_spill]] %s4318_s6 }
   0x8   :  { %4360 = sst [smem:[#allocation28_spill]] %s4319_s7 }
   0x9   :  { %4361 = sst [smem:[#allocation29_spill]] %s4320_s8 }
   0xa   :  { %4362 = sst [smem:[#allocation30_spill]] %s4321_s9 }
   0xb   :  { %4363 = sst [smem:[#allocation31_spill]] %s4322_s10 }
   0xc   :  { %4364 = sst [smem:[#allocation32_spill]] %s4323_s11 }
   0xd   :  { %4365 = sst [smem:[#allocation33_spill]] %s4324_s12 }
   0xe   :  { %4366 = sst [smem:[#allocation34_spill]] %s4326_s14 }
   0xf   :  { %4367 = sst [smem:[#allocation35_spill]] %s4330_s18 }
  0x10   :  { %4368 = sst [smem:[#allocation36_spill]] %s4331_s19 }
  0x11   :  { %4369 = sst [smem:[#allocation37_spill]] %s4332_s20 }
  0x12   :  { %4370 = sst [smem:[#allocation38_spill]] %s4333_s21 }
  0x13   :  { %4371 = sst [smem:[#allocation39_spill]] %s4334_s22 }
  0x14   :  { %27 = vsyncpa [#allocation4], 0 }
  0x15   :  { %29 = vsyncpa [#allocation4 + $0x1], 0  ;;  %s3795_s3 = smov 0   ;;  %s3797_s28 = smov 0  }
  0x16   :  { %s3799_s29 = smov 0   ;;  %s3801_s30 = smov 0  }
  0x17   :  { %s3803_s4 = smov 0   ;;  %s3805_s0 = smov 0  }
  0x18   :  { %s3807_s23 = smov 0   ;;  %s3809_s1 = smov 0  }
  0x19 LB: > { %4372 = sst [smem:[#allocation6_spill]] %s3645_s3  ;;  %s3020_s5 = sadd.s32 4294967295, %s3673_s1   ;;  %s3673_s1 = sphi %s3809_s1, %s35_s1   ;;  %s3669_s23 = sphi %s3807_s23, %s4434_s23   ;;  %s3665_s0 = sphi %s3805_s0, %s4433_s0   ;;  %s3661_s4 = sphi %s3803_s4, %s4432_s4   ;;  %s3657_s30 = sphi %s3801_s30, %s4431_s30   ;;  %s3653_s29 = sphi %s3799_s29, %s4430_s29   ;;  %s3649_s28 = sphi %s3797_s28, %s4429_s28   ;;  %s3645_s3 = sphi %s3795_s3, %s4428_s3  }
  0x1a   : > { %4373 = sst [smem:[#allocation7_spill]] %s3649_s28  ;;  %s3021_s24 = sadd.s32 4294967294, %s3673_s1  }
  0x1b   : > { %4374 = sst [smem:[#allocation8_spill]] %s3653_s29  ;;  %s44_s6 = sadd.s32 1, %s3665_s0 }
  0x1c   : > { %4375 = sst [smem:[#allocation9_spill]] %s3657_s30  ;;  %p45_p0 = scmp.ge.s32.totalorder %s44_s6, 2 }
  0x1d   : > { %4376 = sst [smem:[#allocation10_spill]] %s3661_s4  ;;  %s47_s25 = sadd.s32 1, %s3669_s23 }
  0x1e   : > { %4377 = sst [smem:[#allocation11_spill]] %s3665_s0  ;;  %p611_p1 = scmp.ne.s32.totalorder %s3653_s29, %s3649_s28 }
  0x1f   : > { %4378 = sst [smem:[#allocation12_spill]] %s3669_s23  ;;  %p612_p2 = scmp.eq.s32.totalorder %s3020_s5, 3 }
  0x20   : > { %4379 = sst [smem:[#allocation13_spill]] %s3673_s1  ;;  %s4436_s6 = smov (%p45_p0, %s44_s6), 0 }
  0x21   : > { %4380 = sst [smem:[#allocation14_spill]] %s4436_s6  ;;  %s4438_s25 = smov (!%p45_p0, %s47_s25), %s3669_s23 }
  0x22   : > { %p3844_p3 = por %p612_p2, %p611_p1  ;;  %p617_p4 = scmp.ne.s32.totalorder %s3649_s28, %s3645_s3 }
  0x23   : > { %p49_p5 = scmp.ge.s32.totalorder %s4438_s25, 2  ;;  %p618_p6 = scmp.eq.s32.totalorder %s3021_s24, 3 }
  0x24   : > { %s4381_s26 = scalar_select %p3844_p3, 1, 0 }
  0x25   : > { %p3024_p7 = scmp.ge.s32.totalorder %s3673_s1, 1  ;;  %p769_p8 = scmp.lt.s32.totalorder %s3673_s1, 5 }
  0x26   : > { %4382 = sst [smem:[#allocation15_spill]] %s4381_s26  ;;  %s4440_s25 = smov (%p49_p5, %s4438_s25), 0 }
  0x27   : > { %4383 = sst [smem:[#allocation16_spill]] %s4440_s25  ;;  %p3854_p9 = por %p618_p6, %p617_p4 }
  0x28   : > { %p770_p10 = pnand %p3024_p7, %p769_p8  ;;  %s598_s27 = ssub.s32 %s3669_s23, %s4440_s25 }
  0x29   : > { %s4384_s2 = scalar_select %p3854_p9, 1, 0 }
  0x2a   : > { %s601_s5 = sadd.s32 1, %s3653_s29  ;;  %p599_p11 = scmp.eq.s32.totalorder %s598_s27, 0 }
  0x2b   : > { %4385 = sst [smem:[#allocation17_spill]] %s4384_s2  ;;  %773 = sbr.rel (%p770_p10) target bundleno = 5354 (0x14ea), region = 108 }
  0x2c   : > { %s3862_s6 = scalar_select %p599_p11, %s3653_s29, %s601_s5  }
  0x2e   : > { %4386 = sst [smem:[#allocation18_spill]] %s3862_s6 }
  0x30   : > { %s4341_s24 = sand.u32 1, %s3649_s28   ;;  %p893_p12 = scmp.lt.s32.totalorder %s3661_s4, 1 }
  0x31   : > { %s3868_s0 = sshll.u32 %s4341_s24, 3  ;;  %p897_p13 = scmp.lt.s32.totalorder %s3657_s30, 1 }
  0x32   : > { %s894_s2 = scalar_select %p893_p12, %s3661_s4, 1 }
  0x33   : > { %s3873_s3 = scalar_select %p897_p13, %s3657_s30, 1 }
  0x34   : > { %s3026_s27 = sshll.u32 %s894_s2, 3  ;;  %s4387_s23 = sld [smem:[#allocation21_spill]] }
  0x35   : > { %s3137_s20 = sshll.u32 %s3873_s3, 6  ;;  %s4390_s18 = sld [smem:[#allocation27_spill]] }
  0x36   : > { %s3029_s25 = sshll.u32 %s3873_s3, 2  ;;  %s4391_s7 = sld [smem:[#allocation28_spill]] }
  0x37   : > { %s4393_s8 = sld [smem:[#allocation29_spill]]  ;;  %s943_s21 = scalar_lea.vmem %s4327_s15, %s3873_s3 }
  0x38   : > { %s4394_s9 = sld [smem:[#allocation30_spill]] }
  0x39   : > { %s4395_s10 = sld [smem:[#allocation31_spill]] }
  0x3a   : > { %s3878_s6 = scalar_lea.vmem %s4387_s23, %s3026_s27  ;;  %s4396_s11 = sld [smem:[#allocation32_spill]] }
  0x3b   : > { %s3892_s2 = scalar_lea.vmem %s4390_s18, %s3137_s20  ;;  %s3140_s27 = sshll.u32 %s3873_s3, 4 }
  0x3c   : > { %s3898_s5 = scalar_lea.vmem %s4391_s7, %s3029_s25  ;;  %s4397_s12 = sld [smem:[#allocation33_spill]] }
  0x3d   : > { %4392 = sst [smem:[#allocation19_spill]] %s3898_s5  ;;  %s3903_s28 = scalar_lea.vmem %s4393_s8, %s3137_s20 }
  0x3e   : > { %s3908_s24 = scalar_lea.vmem %s4394_s9, %s3029_s25  ;;  %s4400_s4 = sld [smem:[#allocation35_spill]] }
  0x3f   : > { %s3913_s30 = scalar_lea.vmem %s4395_s10, %s3137_s20  ;;  %s4401_s19 = sld [smem:[#allocation36_spill]] }
  0x40   : > { %s3918_s23 = scalar_lea.vmem %s4396_s11, %s3029_s25  ;;  %s3941_s11 = scalar_lea.vmem %s4328_s16, %s3140_s27 }
  0x41   : > { %s892_s10 = scalar_lea.vmem [#allocation3], %s3868_s0  ;;  %s4402_s18 = sld [smem:[#allocation9_spill]] }
  0x42   : > { %s3924_s1 = scalar_lea.vmem %s4397_s12, %s3140_s27  ;;  %s951_s12 = scalar_lea.vmem %s4329_s17, %s3873_s3 }
  0x43   : > { %4398 = sst [smem:[#allocation20_spill]] %s3924_s1 }
  0x44   : > { %s3950_s26 = scalar_lea.vmem %s4400_s4, %s3137_s20 }
  0x45   : > { %s959_s14 = scalar_lea.vmem %s4401_s19, %s3873_s3 }
  0x47   : > { %p3042_p0 = scmp.ne.s32.totalorder %s4402_s18, 0 }
  0x48   : > { %s4403_s25 = sld [smem:[#allocation22_spill]] (!%p3042_p0) }
  0x49   : > { %964 = sbr.rel (%p3042_p0) target bundleno = 310 (0x136), region = 112  ;;  %s4404_s19 = sld [smem:[#allocation23_spill]] (!%p3042_p0) }
  0x4a   : > { %s4405_s9 = sld [smem:[#allocation24_spill]] (!%p3042_p0) }
  0x4e   : > { %v3515_v0 = vld [vmem:[%s4403_s25 + $0x38] sm:$0xff]   ;;  %v3675_v1 = vmov 0.0   ;;  %v3516_v2 = vld [vmem:[%s4403_s25 + $0x30] sm:$0xff]   ;;  %vm3676_vm0 = vmmov 0   ;;  %v3517_v3 = vld [vmem:[%s4403_s25 + $0x28] sm:$0xff]   ;;  %vm1081_vm1 = vcmask 261120  }
  0x4f   : > { %3224 = vmatprep.subr.bf16.mxu0 %v3675_v1  ;;  %3240 = vmatprep.mubr.msk.bf16.mxu0 %vm3676_vm0, %v3675_v1  ;;  %v3518_v4 = vld [vmem:[%s4403_s25 + $0x20] sm:$0xff]   ;;  %v3519_v5 = vld [vmem:[%s4403_s25 + $0x18] sm:$0xff]   ;;  %v3520_v6 = vld [vmem:[%s4403_s25 + $0x10] sm:$0xff]  }
  0x50   : > { %3225 = vmatpush3.bf16.msra.mxu0 %v3515_v0  ;;  %v3521_v7 = vld [vmem:[%s4403_s25 + $0x8] sm:$0xff]   ;;  %v3522_v8 = vld [vmem:[%s4403_s25] sm:$0xff]  }
  0x51   : > { %3226 = vmatprep.subr.bf16.mxu0 %v3675_v1  ;;  %v965_v9 = vld [vmem:[%s3878_s6] sm:$0xff] }
  0x52   : > { %v966_v10 = vpack.c.bf16 %v965_v9, %v965_v9  ;;  %v3051_v11 = vld [vmem:[%s4404_s19] ss:$0 sm:$0xff] }
  0x53   : > { %v1079_v13 = vld [vmem:[%s4405_s9] sm:$0xff] }
  0x54   : > { %3227 = vmatpush3.bf16.msra.mxu0 %v3516_v2 }
  0x55   : > { %3228 = vmatprep.subr.bf16.mxu0 %v3675_v1 }
  0x58   : > { %3229 = vmatpush3.bf16.msra.mxu0 %v3517_v3 }
  0x59   : > { %3230 = vmatprep.subr.bf16.mxu0 %v3675_v1 }
  0x5c   : > { %3231 = vmatpush3.bf16.msra.mxu0 %v3518_v4 }
  0x5d   : > { %3232 = vmatprep.subr.bf16.mxu0 %v3675_v1 }
  0x60   : > { %3233 = vmatpush3.bf16.msra.mxu0 %v3519_v5 }
  0x61   : > { %3234 = vmatprep.subr.bf16.mxu0 %v3675_v1 }
  0x64   : > { %3235 = vmatpush3.bf16.msra.mxu0 %v3520_v6 }
  0x65   : > { %3236 = vmatprep.subr.bf16.mxu0 %v3675_v1 }
  0x68   : > { %3237 = vmatpush3.bf16.msra.mxu0 %v3521_v7 }
  0x69   : > { %3238 = vmatprep.subr.bf16.mxu0 %v3675_v1 }
  0x6c   : > { %3239 = vmatpush3.bf16.msra.mxu0 %v3522_v8 }
  0x6f   : > { %3241 = vmatmul.mubr.bf16.vlgmr.msra.gmra.mxu0 %v966_v10 }
 0x12f   : > { %v1065_v12 = vpop.f32.mrf.mxu0 }
 0x130   : > { %v1078_v14 = vadd.f32 %v3051_v11, %v1065_v12 }
 0x131   : > { %v3242_v15 = vpop.f32.mrf.mxu0 }
 0x132   : > { %v1080_v16 = vadd.f32 %v1079_v13, %v1078_v14 }
 0x133   : > { %v1068_v17 = vpop.f32.mrf.mxu0 }
 0x134   : > { %1082 = vst.msk [vmem:[#allocation2] sm:$0xff] %vm1081_vm1, %v1080_v16 }
 0x135   : > { %v3243_v18 = vpop.f32.mrf.mxu0 }
 0x136 PF: > { %vm1086_vm2 = vcmask 261120   ;;  %v3523_v26 = vld [vmem:[%s3892_s2 + $0x8] sm:$0xff]   ;;  %v3677_v27 = vmov 0.0   ;;  %v3524_v28 = vld [vmem:[%s3892_s2] sm:$0xff]   ;;  %vm3678_vm3 = vmmov 0   ;;  %s4406_s18 = sld [smem:[#allocation25_spill]] }
 0x137   : > { %3244 = vmatprep.subr.bf16.mxu0 %v3677_v27  ;;  %3268 = vmatprep.subr.bf16.mxu1 %v3677_v27  ;;  %s4408_s29 = sld [smem:[#allocation26_spill]]  ;;  %v3525_v38 = vld [vmem:[%s3903_s28 + $0x8] sm:$0xff]   ;;  %v3526_v40 = vld [vmem:[%s3903_s28] sm:$0xff]   ;;  %vm1361_vm4 = vcmask 64512   ;;  %vm1423_vm5 = vcmask 1043456   ;;  %v3529_v62 = vld [vmem:[%s3892_s2 + $0x18] sm:$0xff]  }
 0x138   : > { %3245 = vmatpush3.bf16.msra.mxu0 %v3523_v26  ;;  %3248 = vmatprep.mubr.msk.bf16.mxu0 %vm3678_vm3, %v3677_v27  ;;  %v3527_v41 = vld [vmem:[%s3913_s30 + $0x8] sm:$0xff]   ;;  %s4410_s1 = sld [smem:[#allocation19_spill]]  ;;  %v3528_v42 = vld [vmem:[%s3913_s30] sm:$0xff]   ;;  %v3530_v4 = vld [vmem:[%s3892_s2 + $0x10] sm:$0xff]  }
 0x139   : > { %3246 = vmatprep.subr.bf16.mxu0 %v3677_v27  ;;  %3270 = vmatprep.mubr.msk.bf16.mxu1 %vm3678_vm3, %v3677_v27  ;;  %v3058_v47 = vld [vmem:[%s3908_s24] ss:$0 sm:$0xff]  ;;  %v3531_v5 = vld [vmem:[%s3913_s30 + $0x18] sm:$0xff]   ;;  %v3532_v6 = vld [vmem:[%s3913_s30 + $0x10] sm:$0xff]   ;;  %s4411_s19 = sld [smem:[#allocation20_spill]] }
 0x13a   : > { %v3062_v57 = vld [vmem:[%s3918_s23] ss:$0 sm:$0xff]  ;;  %v3076_v16 = vld [vmem:[%s3918_s23 + $0x1] ss:$0 sm:$0xff]  ;;  %s4413_s8 = sld [smem:[#allocation34_spill]] }
 0x13b   : > { %v3989_v19 = vld [vmem:[#allocation2] sm:$0xff] }
 0x13c   : > { %v1087_v20 = vsel %vm1086_vm2, %v3989_v19, 0.0  ;;  %3247 = vmatpush3.bf16.msra.mxu0 %v3524_v28  ;;  %s4407_s22 = scalar_lea.vmem %s4406_s18, %s3873_s3  ;;  %s4416_s18 = sld [smem:[#allocation9_spill]] }
 0x13d   : > { %1088 = vadd.xlane.f32.xlu0 %v1087_v20  ;;  %3252 = vmatprep.subr.bf16.mxu0 %v3677_v27  ;;  %v3052_v33 = vld [vmem:[%s4407_s22] ss:$0 sm:$0xff]  ;;  %s4409_s20 = scalar_lea.vmem %s4408_s29, %s3873_s3 }
 0x13e   : > { %v3053_v35 = vld [vmem:[%s4409_s20] ss:$0 sm:$0xff] }
 0x13f   : > { %v3054_v48 = vld [vmem:[%s4410_s1] ss:$0 sm:$0xff] }
 0x140   : > { %s4414_s4 = scalar_lea.vmem %s4413_s8, %s3873_s3 }
 0x142   : > { %p3130_p1 = scmp.ne.s32.totalorder %s4416_s18, 1 }
 0x143   : > { %s4417_s22 = sld [smem:[#allocation37_spill]] (!%p3130_p1) }
 0x144   : > { %s4418_s29 = sld [smem:[#allocation38_spill]] (!%p3130_p1) }
 0x1c6   : > { %v1089_v21 = vpop.xlane.xlu0 %1088 }
 0x1c7   : > { %v1091_v22 = vmul.f32 0.03125, %v1089_v21 }
 0x1c9   : > { %v1092_v23 = vsub.f32 %v3989_v19, %v1091_v22 }
 0x1cb   : > { %v1093_v24 = vmul.f32 %v1092_v23, %v1092_v23 }
 0x1cd   : > { %v1094_v25 = vsel %vm1086_vm2, %v1093_v24, 0.0 }
 0x1ce   : > { %1095 = vadd.xlane.f32.xlu0 %v1094_v25 }
 0x257   : > { %v1096_v29 = vpop.xlane.xlu0 %1095 }
 0x258   : > { %v1097_v30 = vmul.f32 0.03125, %v1096_v29 }
 0x25a   : > { %v1098_v31 = vadd.f32 1e-06, %v1097_v30 }
 0x25c   : > { %3557 = vrsqrt.f32 %v1098_v31 }
 0x269   : > { %v3558_v32 = vpop.eup %3557 }
 0x26a   : > { %v1100_v34 = vmul.f32 %v3558_v32, %v1092_v23 }
 0x26c   : > { %v1107_v36 = vmul.f32 %v3052_v33, %v1100_v34  ;;  %v3533_v34 = vld [vmem:[%s3903_s28 + $0x18] sm:$0xff]  }
 0x26e   : > { %v1114_v37 = vadd.f32 %v3053_v35, %v1107_v36  ;;  %v3534_v36 = vld [vmem:[%s3903_s28 + $0x10] sm:$0xff]  }
 0x270   : > { %v4016_v39 = vpack.c.bf16 %v1114_v37, %v1114_v37 }
 0x272   : > { %3249 = vmatmul.mubr.msk.bf16.vlgmr.msra.gmra.mxu0 %vm1086_vm2, %v4016_v39 }
 0x273   : > { %3253 = vmatpush3.bf16.msra.mxu0 %v3525_v38  ;;  %3256 = vmatprep.mubr.msk.bf16.mxu0 %vm3678_vm3, %v3677_v27 }
 0x274   : > { %3254 = vmatprep.subr.bf16.mxu0 %v3677_v27 }
 0x277   : > { %3255 = vmatpush3.bf16.msra.mxu0 %v3526_v40 }
 0x278   : > { %3260 = vmatprep.subr.bf16.mxu0 %v3677_v27 }
 0x27a   : > { %3257 = vmatmul.mubr.msk.bf16.vlgmr.msra.gmra.mxu0 %vm1086_vm2, %v4016_v39 }
 0x27b   : > { %3261 = vmatpush3.bf16.msra.mxu0 %v3527_v41  ;;  %3264 = vmatprep.mubr.msk.bf16.mxu0 %vm3678_vm3, %v3677_v27 }
 0x27c   : > { %3262 = vmatprep.subr.bf16.mxu0 %v3677_v27 }
 0x27f   : > { %3263 = vmatpush3.bf16.msra.mxu0 %v3528_v42  ;;  %v3072_v42 = vld [vmem:[%s3908_s24 + $0x1] ss:$0 sm:$0xff] }
 0x280   : > { %3274 = vmatprep.subr.bf16.mxu0 %v3677_v27 }
 0x282   : > { %3265 = vmatmul.mubr.msk.bf16.vlgmr.msra.gmra.mxu0 %vm1086_vm2, %v4016_v39 }
 0x283   : > { %3276 = vmatprep.mubr.msk.bf16.mxu0 %vm3678_vm3, %v3677_v27 }
 0x332   : > { %v1235_v43 = vpop.f32.mrf.mxu0 }
 0x333   : > { %v1236_v52 = vadd.f32 %v3054_v48, %v1235_v43  ;;  %v3068_v43 = vld [vmem:[%s4410_s1 + $0x1] ss:$0 sm:$0xff] }
 0x334   : > { %v3250_v44 = vpop.f32.mrf.mxu0 }
 0x335   : > { %v1357_v58 = vmul.f32 0.35355338, %v1236_v52 }
 0x336   : > { %v1238_v45 = vpop.f32.mrf.mxu0 }
 0x337   : > { %v1358_v63 = vpack.c.bf16 %v1357_v58, %v1357_v58 }
 0x338   : > { %v3251_v46 = vpop.f32.mrf.mxu0 }
 0x33a   : > { %v1293_v49 = vpop.f32.mrf.mxu0 }
 0x33b   : > { %v1294_v50 = vadd.f32 %v3058_v47, %v1293_v49 }
 0x33c   : > { %v3258_v51 = vpop.f32.mrf.mxu0 }
 0x33d   : > { %v1359_v53 = vpack.c.bf16 %v1294_v50, %v1294_v50 }
 0x33e   : > { %v1296_v54 = vpop.f32.mrf.mxu0 }
 0x33f   : > { %v1366_v55 = vsel %vm1361_vm4, %v1359_v53, 0 }
 0x340   : > { %v3259_v56 = vpop.f32.mrf.mxu0  ;;  %3269 = vmatpush3.bf16.xpose.msra.mxu1 %v1366_v55 }
 0x341   : > { %3280 = vmatprep.subr.bf16.mxu1 %v3677_v27 }
 0x342   : > { %v1351_v59 = vpop.f32.mrf.mxu0 }
 0x343   : > { %v1352_v60 = vadd.f32 %v3062_v57, %v1351_v59 }
 0x344   : > { %v3266_v61 = vpop.f32.mrf.mxu0 }
 0x345   : > { %v1360_v0 = vpack.c.bf16 %v1352_v60, %v1352_v60 }
 0x346   : > { %v1354_v1 = vpop.f32.mrf.mxu0 }
 0x347   : > { %v1425_v2 = vsel %vm1423_vm5, %v1360_v0, 0  ;;  %3271 = vmatmul.mubr.msk.bf16.vlgmr.msra.gmra.mxu1 %vm1361_vm4, %v1358_v63  ;;  %v1165_v0 = vld [vmem:[%s4411_s19 + $0x4] sm:$0xf] }
 0x348   : > { %v3267_v3 = vpop.f32.mrf.mxu0  ;;  %3275 = vmatpush3.bf16.msra.mxu0 %v1425_v2  ;;  %3281 = vmatpush3.bf16.msra.mxu1 %v3529_v62  ;;  %v1755_v1 = vsel %vm1423_vm5, %v1165_v0, 0 }
 0x349   : > { %3282 = vmatprep.subr.bf16.mxu1 %v3677_v27  ;;  %3284 = vmatprep.mubr.msk.bf16.mxu1 %vm3678_vm3, %v3677_v27 }
 0x34a   : > { %3288 = vmatprep.subr.bf16.mxu0 %v3677_v27 }
 0x34c   : > { %3283 = vmatpush3.bf16.msra.mxu1 %v3530_v4  ;;  %v1164_v4 = vld [vmem:[%s4411_s19] sm:$0xf] }
 0x34d   : > { %3296 = vmatprep.subr.bf16.mxu1 %v3677_v27 }
 0x34f   : > { %3285 = vmatmul.mubr.msk.bf16.vlgmr.msra.gmra.mxu1 %vm1086_vm2, %v4016_v39 }
 0x350   : > { %3297 = vmatpush3.bf16.msra.mxu1 %v3531_v5  ;;  %3300 = vmatprep.mubr.msk.bf16.mxu1 %vm3678_vm3, %v3677_v27 }
 0x351   : > { %3298 = vmatprep.subr.bf16.mxu1 %v3677_v27 }
 0x354   : > { %3299 = vmatpush3.bf16.msra.mxu1 %v3532_v6 }
 0x355   : > { %3310 = vmatprep.subr.bf16.mxu1 %v3677_v27 }
 0x357   : > { %3301 = vmatmul.mubr.msk.bf16.vlgmr.msra.gmra.mxu1 %vm1086_vm2, %v4016_v39 }
 0x358   : > { %3312 = vmatprep.mubr.msk.bf16.mxu1 %vm3678_vm3, %v3677_v27 }
 0x407   : > { %v1402_v7 = vpop.f32.mrf.mxu1 }
 0x408   : > { %v1408_v8 = vsel %vm1361_vm4, %v1402_v7, -inf }
 0x409   : > { %1409 = vmax.xlane.f32.xlu1 %v1408_v8  ;;  %v3272_v9 = vpop.f32.mrf.mxu1  ;;  %v3535_v8 = vld [vmem:[%s3903_s28 + $0x28] sm:$0xff]  }
 0x40b   : > { %v1405_v10 = vpop.f32.mrf.mxu1 }
 0x40c   : > { %v3536_v10 = vld [vmem:[%s3903_s28 + $0x20] sm:$0xff]  }
 0x40d   : > { %v3273_v11 = vpop.f32.mrf.mxu1 }
 0x40f   : > { %v1520_v12 = vpop.f32.mrf.mxu1 }
 0x410   : > { %v1521_v47 = vadd.f32 %v3068_v43, %v1520_v12  ;;  %v3537_v12 = vld [vmem:[%s3892_s2 + $0x28] sm:$0xff]  }
 0x411   : > { %v3286_v13 = vpop.f32.mrf.mxu1 }
 0x412   : > { %v1642_v52 = vmul.f32 0.35355338, %v1521_v47  ;;  %v3092_v47 = vld [vmem:[%s3918_s23 + $0x2] ss:$0 sm:$0xff] }
 0x413   : > { %v1523_v14 = vpop.f32.mrf.mxu1 }
 0x414   : > { %v1643_v53 = vpack.c.bf16 %v1642_v52, %v1642_v52 }
 0x415   : > { %v3287_v15 = vpop.f32.mrf.mxu1 }
 0x417   : > { %v1636_v17 = vpop.f32.mrf.mxu1 }
 0x418   : > { %v1637_v18 = vadd.f32 %v3076_v16, %v1636_v17  ;;  %v3538_v16 = vld [vmem:[%s3892_s2 + $0x20] sm:$0xff]  }
 0x419   : > { %v3302_v20 = vpop.f32.mrf.mxu1 }
 0x41a   : > { %v1645_v21 = vpack.c.bf16 %v1637_v18, %v1637_v18  ;;  %v3539_v20 = vld [vmem:[%s3913_s30 + $0x28] sm:$0xff]  }
 0x41b   : > { %v1639_v22 = vpop.f32.mrf.mxu1 }
 0x41c   : > { %v1708_v23 = vsel %vm1423_vm5, %v1645_v21, 0 }
 0x41d   : > { %v3303_v24 = vpop.f32.mrf.mxu1  ;;  %3311 = vmatpush3.bf16.msra.mxu1 %v1708_v23  ;;  %v3540_v23 = vld [vmem:[%s3913_s30 + $0x20] sm:$0xff]  }
 0x41e   : > { %3322 = vmatprep.subr.bf16.mxu1 %v3677_v27 }
 0x492   : > { %v1410_v25 = vpop.xlane.xlu1 %1409 }
 0x493   : > { %v1411_v26 = vsub.f32 %v1402_v7, %v1410_v25  ;;  %v1801_v7 = vsel %vm1423_vm5, %v1164_v4, 0  ;;  %v3088_v25 = vld [vmem:[%s3908_s24 + $0x2] ss:$0 sm:$0xff] }
 0x495   : > { %v1412_v28 = vmul.f32 1.442695, %v1411_v26 }
 0x497   : > { %3559 = vpow2.f32 %v1412_v28 }
 0x4a4   : > { %v3560_v29 = vpop.eup %3559 }
 0x4a5   : > { %v1414_v30 = vsel %vm1361_vm4, %v3560_v29, 0.0 }
 0x4a6   : > { %1415 = vadd.xlane.f32.xlu1 %v1414_v30 }
 0x52f   : > { %v1416_v31 = vpop.xlane.xlu1 %1415 }
 0x530   : > { %3561 = vrcp.f32 %v1416_v31 }
 0x53d   : > { %v3562_v32 = vpop.eup %3561 }
 0x53e   : > { %v1418_v33 = vmul.f32 %v3562_v32, %v3560_v29 }
 0x540   : > { %v1419_v35 = vpack.c.bf16 %v1418_v33, %v1418_v33 }
 0x542   : > { %3277 = vmatmul.mubr.msk.bf16.vlgmr.msra.gmra.mxu0 %vm1361_vm4, %v1419_v35 }
 0x543   : > { %3289 = vmatpush3.bf16.msra.mxu0 %v3533_v34  ;;  %3292 = vmatprep.mubr.msk.bf16.mxu0 %vm3678_vm3, %v3677_v27 }
 0x544   : > { %3290 = vmatprep.subr.bf16.mxu0 %v3677_v27 }
 0x547   : > { %3291 = vmatpush3.bf16.msra.mxu0 %v3534_v36 }
 0x548   : > { %3304 = vmatprep.subr.bf16.mxu0 %v3677_v27 }
 0x54a   : > { %3293 = vmatmul.mubr.msk.bf16.vlgmr.msra.gmra.mxu0 %vm1086_vm2, %v4016_v39 }
 0x54b   : > { %3306 = vmatprep.mubr.msk.bf16.mxu0 %vm3678_vm3, %v3677_v27 }
 0x602   : > { %v1461_v37 = vpop.f32.mrf.mxu0 }
 0x603   : > { %v1467_v9 = vpack.c.bf16 %v1461_v37, %v1461_v37 }
 0x604   : > { %v3278_v38 = vpop.f32.mrf.mxu0 }
 0x605   : > { %v3084_v38 = vld [vmem:[%s4410_s1 + $0x2] ss:$0 sm:$0xff] }
 0x606   : > { %v1464_v40 = vpop.f32.mrf.mxu0 }
 0x608   : > { %v3279_v41 = vpop.f32.mrf.mxu0 }
 0x60a   : > { %v1578_v44 = vpop.f32.mrf.mxu0 }
 0x60b   : > { %v1579_v45 = vadd.f32 %v3072_v42, %v1578_v44 }
 0x60c   : > { %v3294_v46 = vpop.f32.mrf.mxu0 }
 0x60d   : > { %v1644_v48 = vpack.c.bf16 %v1579_v45, %v1579_v45 }
 0x60e   : > { %v1581_v49 = vpop.f32.mrf.mxu0 }
 0x60f   : > { %v1650_v50 = vsel %vm1361_vm4, %v1644_v48, 0 }
 0x610   : > { %v3295_v51 = vpop.f32.mrf.mxu0  ;;  %3305 = vmatpush3.bf16.xpose.msra.mxu0 %v1650_v50 }
 0x611   : > { %3316 = vmatprep.subr.bf16.mxu0 %v3677_v27 }
 0x617   : > { %3307 = vmatmul.mubr.msk.bf16.vlgmr.msra.gmra.mxu0 %vm1361_vm4, %v1643_v53 }
 0x618   : > { %3318 = vmatprep.mubr.msk.bf16.mxu0 %vm3678_vm3, %v3677_v27  ;;  %3317 = vmatpush3.bf16.msra.mxu0 %v1755_v1  ;;  %v1166_v1 = vld [vmem:[%s4411_s19 + $0x8] sm:$0xf] }
 0x619   : > { %3328 = vmatprep.subr.bf16.mxu0 %v3677_v27 }
 0x6d7   : > { %v1686_v54 = vpop.f32.mrf.mxu0 }
 0x6d8   : > { %v1692_v55 = vsel %vm1361_vm4, %v1686_v54, -inf }
 0x6d9   : > { %1693 = vmax.xlane.f32.xlu0 %v1692_v55  ;;  %v3308_v56 = vpop.f32.mrf.mxu0 }
 0x6db   : > { %v1689_v57 = vpop.f32.mrf.mxu0 }
 0x6dd   : > { %v3309_v58 = vpop.f32.mrf.mxu0 }
 0x762   : > { %v1694_v59 = vpop.xlane.xlu0 %1693 }
 0x763   : > { %v1695_v60 = vsub.f32 %v1686_v54, %v1694_v59 }
 0x765   : > { %v1696_v61 = vmul.f32 1.442695, %v1695_v60 }
 0x767   : > { %3563 = vpow2.f32 %v1696_v61 }
 0x774   : > { %v3564_v62 = vpop.eup %3563 }
 0x775   : > { %v1698_v63 = vsel %vm1361_vm4, %v3564_v62, 0.0 }
 0x776   : > { %1699 = vadd.xlane.f32.xlu1 %v1698_v63 }
 0x7ff   : > { %v1700_v2 = vpop.xlane.xlu1 %1699 }
 0x800   : > { %3565 = vrcp.f32 %v1700_v2  ;;  %v2130_v2 = vsel %vm1423_vm5, %v1166_v1, 0 }
 0x80d   : > { %v3566_v3 = vpop.eup %3565 }
 0x80e   : > { %v1702_v5 = vmul.f32 %v3566_v3, %v3564_v62 }
 0x810   : > { %v1703_v6 = vpack.c.bf16 %v1702_v5, %v1702_v5 }
 0x812   : > { %3313 = vmatmul.mubr.msk.bf16.vlgmr.msra.gmra.mxu1 %vm1361_vm4, %v1703_v6  ;;  %v3541_v6 = vld [vmem:[%s3892_s2 + $0x38] sm:$0xff]  }
 0x813   : > { %3323 = vmatpush3.bf16.msra.mxu1 %v1801_v7  ;;  %3324 = vmatprep.mubr.msk.bf16.mxu1 %vm3678_vm3, %v3677_v27 }
 0x814   : > { %3336 = vmatprep.subr.bf16.mxu1 %v3677_v27 }
 0x81a   : > { %3325 = vmatmul.mubr.msk.bf16.vlgmr.msra.gmra.mxu1 %vm1361_vm4, %v1467_v9  ;;  %v3543_v9 = vld [vmem:[%s3913_s30 + $0x38] sm:$0xff]  }
 0x81b   : > { %3337 = vmatpush3.bf16.msra.mxu1 %v3535_v8  ;;  %3340 = vmatprep.mubr.msk.bf16.mxu1 %vm3678_vm3, %v3677_v27  ;;  %v3542_v8 = vld [vmem:[%s3892_s2 + $0x30] sm:$0xff]  }
 0x81c   : > { %3338 = vmatprep.subr.bf16.mxu1 %v3677_v27 }
 0x81f   : > { %3339 = vmatpush3.bf16.msra.mxu1 %v3536_v10  ;;  %v3544_v10 = vld [vmem:[%s3913_s30 + $0x30] sm:$0xff]  }
 0x820   : > { %3352 = vmatprep.subr.bf16.mxu1 %v3677_v27 }
 0x822   : > { %3341 = vmatmul.mubr.msk.bf16.vlgmr.msra.gmra.mxu1 %vm1086_vm2, %v4016_v39 }
 0x823   : > { %3354 = vmatprep.mubr.msk.bf16.mxu1 %vm3678_vm3, %v3677_v27 }
 0x8d2   : > { %v1744_v11 = vpop.f32.mrf.mxu1 }
 0x8d3   : > { %v1750_v13 = vpack.c.bf16 %v1744_v11, %v1744_v11 }
 0x8d4   : > { %v3314_v14 = vpop.f32.mrf.mxu1 }
 0x8d5   : > { %3319 = vmatmul.mubr.msk.bf16.vlgmr.msra.gmra.mxu0 %vm1361_vm4, %v1750_v13 }
 0x8d6   : > { %v1747_v15 = vpop.f32.mrf.mxu1  ;;  %3329 = vmatpush3.bf16.msra.mxu0 %v3537_v12  ;;  %3332 = vmatprep.mubr.msk.bf16.mxu0 %vm3678_vm3, %v3677_v27  ;;  %v3545_v12 = vld [vmem:[%s3903_s28 + $0x38] sm:$0xff]  }
 0x8d7   : > { %3330 = vmatprep.subr.bf16.mxu0 %v3677_v27 }
 0x8d8   : > { %v3315_v17 = vpop.f32.mrf.mxu1 }
 0x8da   : > { %v4114_v18 = vpop.f32.mrf.mxu1  ;;  %3331 = vmatpush3.bf16.msra.mxu0 %v3538_v16  ;;  %v3546_v16 = vld [vmem:[%s3903_s28 + $0x30] sm:$0xff]  }
 0x8db   : > { %3344 = vmatprep.subr.bf16.mxu0 %v3677_v27 }
 0x8dc   : > { %v3326_v21 = vpop.f32.mrf.mxu1 }
 0x8dd   : > { %3333 = vmatmul.mubr.msk.bf16.vlgmr.msra.gmra.mxu0 %vm1086_vm2, %v4016_v39 }
 0x8de   : > { %v1840_v22 = vpop.f32.mrf.mxu1  ;;  %3345 = vmatpush3.bf16.msra.mxu0 %v3539_v20  ;;  %3348 = vmatprep.mubr.msk.bf16.mxu0 %vm3678_vm3, %v3677_v27 }
 0x8df   : > { %3346 = vmatprep.subr.bf16.mxu0 %v3677_v27 }
 0x8e0   : > { %v3327_v24 = vpop.f32.mrf.mxu1 }
 0x8e1   : > { %v3107_v24 = vld [vmem:[%s3918_s23 + $0x3] ss:$0 sm:$0xff] }
 0x8e2   : > { %v1953_v26 = vpop.f32.mrf.mxu1  ;;  %3347 = vmatpush3.bf16.msra.mxu0 %v3540_v23 }
 0x8e3   : > { %v1954_v28 = vadd.f32 %v3088_v25, %v1953_v26  ;;  %3358 = vmatprep.subr.bf16.mxu0 %v3677_v27 }
 0x8e4   : > { %v3342_v29 = vpop.f32.mrf.mxu1 }
 0x8e5   : > { %v2019_v30 = vpack.c.bf16 %v1954_v28, %v1954_v28  ;;  %3349 = vmatmul.mubr.msk.bf16.vlgmr.msra.gmra.mxu0 %vm1086_vm2, %v4016_v39 }
 0x8e6   : > { %v1956_v31 = vpop.f32.mrf.mxu1  ;;  %3360 = vmatprep.mubr.msk.bf16.mxu0 %vm3678_vm3, %v3677_v27 }
 0x8e7   : > { %v2025_v32 = vsel %vm1361_vm4, %v2019_v30, 0 }
 0x8e8   : > { %v3343_v33 = vpop.f32.mrf.mxu1  ;;  %3353 = vmatpush3.bf16.xpose.msra.mxu1 %v2025_v32 }
 0x8e9   : > { %3364 = vmatprep.subr.bf16.mxu1 %v3677_v27 }
 0x995   : > { %v4132_v34 = vpop.f32.mrf.mxu0 }
 0x997   : > { %v3320_v35 = vpop.f32.mrf.mxu0 }
 0x999   : > { %v1794_v36 = vpop.f32.mrf.mxu0 }
 0x99b   : > { %v3321_v37 = vpop.f32.mrf.mxu0 }
 0x99d   : > { %v1895_v40 = vpop.f32.mrf.mxu0 }
 0x99e   : > { %v1896_v41 = vadd.f32 %v3084_v38, %v1895_v40  ;;  %v3103_v40 = vld [vmem:[%s3908_s24 + $0x3] ss:$0 sm:$0xff]  ;;  %s4412_s24 = scalar_lea.vmem %s4325_s13, %s3873_s3 }
 0x99f   : > { %v3334_v42 = vpop.f32.mrf.mxu0 }
 0x9a0   : > { %v2017_v43 = vmul.f32 0.35355338, %v1896_v41  ;;  %v3099_v41 = vld [vmem:[%s4410_s1 + $0x3] ss:$0 sm:$0xff] }
 0x9a1   : > { %v1898_v44 = vpop.f32.mrf.mxu0 }
 0x9a2   : > { %v2018_v45 = vpack.c.bf16 %v2017_v43, %v2017_v43 }
 0x9a3   : > { %v3335_v46 = vpop.f32.mrf.mxu0 }
 0x9a4   : > { %3355 = vmatmul.mubr.msk.bf16.vlgmr.msra.gmra.mxu1 %vm1361_vm4, %v2018_v45 }
 0x9a5   : > { %v2011_v48 = vpop.f32.mrf.mxu0  ;;  %3366 = vmatprep.mubr.msk.bf16.mxu1 %vm3678_vm3, %v3677_v27  ;;  %3365 = vmatpush3.bf16.msra.mxu1 %v2130_v2 }
 0x9a6   : > { %v2012_v49 = vadd.f32 %v3092_v47, %v2011_v48  ;;  %3378 = vmatprep.subr.bf16.mxu1 %v3677_v27 }
 0x9a7   : > { %v3350_v50 = vpop.f32.mrf.mxu0 }
 0x9a8   : > { %v2020_v51 = vpack.c.bf16 %v2012_v49, %v2012_v49 }
 0x9a9   : > { %v2014_v52 = vpop.f32.mrf.mxu0 }
 0x9aa   : > { %v2083_v53 = vsel %vm1423_vm5, %v2020_v51, 0 }
 0x9ab   : > { %v3351_v54 = vpop.f32.mrf.mxu0  ;;  %3359 = vmatpush3.bf16.msra.mxu0 %v2083_v53 }
 0x9ac   : > { %3370 = vmatprep.subr.bf16.mxu0 %v3677_v27 }
 0xa64   : > { %v2061_v55 = vpop.f32.mrf.mxu1 }
 0xa65   : > { %v2067_v56 = vsel %vm1361_vm4, %v2061_v55, -inf }
 0xa66   : > { %2068 = vmax.xlane.f32.xlu0 %v2067_v56  ;;  %v3356_v57 = vpop.f32.mrf.mxu1 }
 0xa68   : > { %v2064_v58 = vpop.f32.mrf.mxu1 }
 0xa6a   : > { %v3357_v59 = vpop.f32.mrf.mxu1 }
 0xaef   : > { %v2069_v60 = vpop.xlane.xlu0 %2068 }
 0xaf0   : > { %v2070_v61 = vsub.f32 %v2061_v55, %v2069_v60  ;;  %v1167_v60 = vld [vmem:[%s4411_s19 + $0xc] sm:$0xf] }
 0xaf2   : > { %v2071_v62 = vmul.f32 1.442695, %v2070_v61  ;;  %v2460_v61 = vsel %vm1423_vm5, %v1167_v60, 0 }
 0xaf4   : > { %3567 = vpow2.f32 %v2071_v62 }
 0xb01   : > { %v3568_v63 = vpop.eup %3567 }
 0xb02   : > { %v2073_v0 = vsel %vm1361_vm4, %v3568_v63, 0.0 }
 0xb03   : > { %2074 = vadd.xlane.f32.xlu1 %v2073_v0 }
 0xb8c   : > { %v2075_v3 = vpop.xlane.xlu1 %2074 }
 0xb8d   : > { %3569 = vrcp.f32 %v2075_v3 }
 0xb9a   : > { %v3570_v4 = vpop.eup %3569 }
 0xb9b   : > { %v2077_v5 = vmul.f32 %v3570_v4, %v3568_v63 }
 0xb9d   : > { %v2078_v7 = vpack.c.bf16 %v2077_v5, %v2077_v5 }
 0xb9f   : > { %3361 = vmatmul.mubr.msk.bf16.vlgmr.msra.gmra.mxu0 %vm1361_vm4, %v2078_v7 }
 0xba0   : > { %3371 = vmatpush3.bf16.msra.mxu0 %v3541_v6  ;;  %3374 = vmatprep.mubr.msk.bf16.mxu0 %vm3678_vm3, %v3677_v27 }
 0xba1   : > { %3372 = vmatprep.subr.bf16.mxu0 %v3677_v27 }
 0xba4   : > { %3373 = vmatpush3.bf16.msra.mxu0 %v3542_v8 }
 0xba5   : > { %3386 = vmatprep.subr.bf16.mxu0 %v3677_v27 }
 0xba7   : > { %3375 = vmatmul.mubr.msk.bf16.vlgmr.msra.gmra.mxu0 %vm1086_vm2, %v4016_v39 }
 0xba8   : > { %3387 = vmatpush3.bf16.msra.mxu0 %v3543_v9  ;;  %3390 = vmatprep.mubr.msk.bf16.mxu0 %vm3678_vm3, %v3677_v27  ;;  %v3114_v9 = vld [vmem:[%s4412_s24] ss:$0 sm:$0xff] }
 0xba9   : > { %3388 = vmatprep.subr.bf16.mxu0 %v3677_v27 }
 0xbac   : > { %3389 = vmatpush3.bf16.msra.mxu0 %v3544_v10 }
 0xbad   : > { %3400 = vmatprep.subr.bf16.mxu0 %v3677_v27 }
 0xbaf   : > { %3391 = vmatmul.mubr.msk.bf16.vlgmr.msra.gmra.mxu0 %vm1086_vm2, %v4016_v39 }
 0xbb0   : > { %3402 = vmatprep.mubr.msk.bf16.mxu0 %vm3678_vm3, %v3677_v27 }
 0xc5f   : > { %v2119_v11 = vpop.f32.mrf.mxu0 }
 0xc60   : > { %v2125_v13 = vpack.c.bf16 %v2119_v11, %v2119_v11 }
 0xc61   : > { %v3362_v14 = vpop.f32.mrf.mxu0 }
 0xc62   : > { %3367 = vmatmul.mubr.msk.bf16.vlgmr.msra.gmra.mxu1 %vm1361_vm4, %v2125_v13 }
 0xc63   : > { %v2122_v15 = vpop.f32.mrf.mxu0  ;;  %3379 = vmatpush3.bf16.msra.mxu1 %v3545_v12  ;;  %3382 = vmatprep.mubr.msk.bf16.mxu1 %vm3678_vm3, %v3677_v27 }
 0xc64   : > { %3380 = vmatprep.subr.bf16.mxu1 %v3677_v27 }
 0xc65   : > { %v3363_v17 = vpop.f32.mrf.mxu0 }
 0xc67   : > { %v2225_v20 = vpop.f32.mrf.mxu0  ;;  %3381 = vmatpush3.bf16.msra.mxu1 %v3546_v16 }
 0xc68   : > { %3394 = vmatprep.subr.bf16.mxu1 %v3677_v27  ;;  %v2226_v45 = vadd.f32 %v3099_v41, %v2225_v20  ;;  %v3554_v41 = vld [vmem:[%s3950_s26 + $0x10] sm:$0xff]  }
 0xc69   : > { %v3376_v21 = vpop.f32.mrf.mxu0 }
 0xc6a   : > { %3383 = vmatmul.mubr.msk.bf16.vlgmr.msra.gmra.mxu1 %vm1086_vm2, %v4016_v39  ;;  %v1838_v39 = vadd.f32 %v4114_v18, %v4132_v34  ;;  %v2347_v50 = vmul.f32 0.35355338, %v2226_v45 }
 0xc6b   : > { %v2228_v22 = vpop.f32.mrf.mxu0  ;;  %3396 = vmatprep.mubr.msk.bf16.mxu1 %vm3678_vm3, %v3677_v27 }
 0xc6c   : > { %v2348_v18 = vpack.c.bf16 %v2347_v50, %v2347_v50 }
 0xc6d   : > { %v3377_v23 = vpop.f32.mrf.mxu0 }
 0xc6e   : > { %v3547_v23 = vld [vmem:[%s3941_s11 + $0x8] sm:$0xff]  }
 0xc6f   : > { %v2341_v25 = vpop.f32.mrf.mxu0 }
 0xc70   : > { %v2342_v26 = vadd.f32 %v3107_v24, %v2341_v25 }
 0xc71   : > { %v3392_v28 = vpop.f32.mrf.mxu0 }
 0xc72   : > { %v2350_v29 = vpack.c.bf16 %v2342_v26, %v2342_v26 }
 0xc73   : > { %v2344_v30 = vpop.f32.mrf.mxu0 }
 0xc74   : > { %v2413_v31 = vsel %vm1423_vm5, %v2350_v29, 0  ;;  %v3115_v29 = vld [vmem:[%s4414_s4] ss:$0 sm:$0xff] }
 0xc75   : > { %v3393_v32 = vpop.f32.mrf.mxu0  ;;  %3401 = vmatpush3.bf16.msra.mxu0 %v2413_v31  ;;  %v3116_v31 = vld [vmem:[%s943_s21] ss:$0 sm:$0xff] }
 0xc76   : > { %3412 = vmatprep.subr.bf16.mxu0 %v3677_v27 }
 0xd22   : > { %v2166_v33 = vpop.f32.mrf.mxu1 }
 0xd23   : > { %v2172_v35 = vadd.f32 %v2166_v33, %v1838_v39 }
 0xd24   : > { %v3368_v36 = vpop.f32.mrf.mxu1 }
 0xd25   : > { %v3550_v36 = vld [vmem:[%s3950_s26 + $0x30] sm:$0xff]  }
 0xd26   : > { %v2169_v37 = vpop.f32.mrf.mxu1 }
 0xd27   : > { %v3551_v37 = vld [vmem:[%s3950_s26 + $0x28] sm:$0xff]  }
 0xd28   : > { %v3369_v38 = vpop.f32.mrf.mxu1 }
 0xd29   : > { %v3552_v38 = vld [vmem:[%s3950_s26 + $0x20] sm:$0xff]  }
 0xd2a   : > { %v2283_v42 = vpop.f32.mrf.mxu1 }
 0xd2b   : > { %v2284_v43 = vadd.f32 %v3103_v40, %v2283_v42  ;;  %v3553_v40 = vld [vmem:[%s3950_s26 + $0x18] sm:$0xff]   ;;  %v3555_v42 = vld [vmem:[%s3950_s26 + $0x8] sm:$0xff]  }
 0xd2c   : > { %v3384_v44 = vpop.f32.mrf.mxu1 }
 0xd2d   : > { %v2349_v46 = vpack.c.bf16 %v2284_v43, %v2284_v43  ;;  %v3556_v43 = vld [vmem:[%s3950_s26] sm:$0xff]  }
 0xd2e   : > { %v2286_v47 = vpop.f32.mrf.mxu1  ;;  %v3117_v44 = vld [vmem:[%s951_s12] ss:$0 sm:$0xff] }
 0xd2f   : > { %v2355_v48 = vsel %vm1361_vm4, %v2349_v46, 0 }
 0xd30   : > { %v3385_v49 = vpop.f32.mrf.mxu1  ;;  %3395 = vmatpush3.bf16.xpose.msra.mxu1 %v2355_v48 }
 0xd31   : > { %3406 = vmatprep.subr.bf16.mxu1 %v3677_v27 }
 0xd37   : > { %3397 = vmatmul.mubr.msk.bf16.vlgmr.msra.gmra.mxu1 %vm1361_vm4, %v2348_v18 }
 0xd38   : > { %3408 = vmatprep.mubr.msk.bf16.mxu1 %vm3678_vm3, %v3677_v27  ;;  %3407 = vmatpush3.bf16.msra.mxu1 %v2460_v61 }
 0xd39   : > { %3420 = vmatprep.subr.bf16.mxu1 %v3677_v27 }
 0xdf7   : > { %v2391_v34 = vpop.f32.mrf.mxu1 }
 0xdf8   : > { %v2397_v51 = vsel %vm1361_vm4, %v2391_v34, -inf }
 0xdf9   : > { %2398 = vmax.xlane.f32.xlu0 %v2397_v51  ;;  %v3398_v52 = vpop.f32.mrf.mxu1 }
 0xdfb   : > { %v2394_v53 = vpop.f32.mrf.mxu1 }
 0xdfd   : > { %v3399_v54 = vpop.f32.mrf.mxu1 }
 0xe82   : > { %v2399_v55 = vpop.xlane.xlu0 %2398 }
 0xe83   : > { %v2400_v56 = vsub.f32 %v2391_v34, %v2399_v55 }
 0xe85   : > { %v2401_v57 = vmul.f32 1.442695, %v2400_v56 }
 0xe87   : > { %3571 = vpow2.f32 %v2401_v57  ;;  %v3121_v57 = vld [vmem:[%s959_s14] ss:$0 sm:$0xff] }
 0xe94   : > { %v3572_v58 = vpop.eup %3571 }
 0xe95   : > { %v2403_v59 = vsel %vm1361_vm4, %v3572_v58, 0.0 }
 0xe96   : > { %2404 = vadd.xlane.f32.xlu1 %v2403_v59 }
 0xf1f   : > { %v2405_v62 = vpop.xlane.xlu1 %2404 }
 0xf20   : > { %3573 = vrcp.f32 %v2405_v62 }
 0xf2d   : > { %v3574_v63 = vpop.eup %3573 }
 0xf2e   : > { %v2407_v0 = vmul.f32 %v3574_v63, %v3572_v58 }
 0xf30   : > { %v2408_v1 = vpack.c.bf16 %v2407_v0, %v2407_v0 }
 0xf32   : > { %3403 = vmatmul.mubr.msk.bf16.vlgmr.msra.gmra.mxu0 %vm1361_vm4, %v2408_v1 }
 0xf33   : > { %3416 = vmatprep.mubr.msk.bf16.mxu0 %vm3678_vm3, %v3677_v27  ;;  %3413 = vmatpush3.bf16.msra.mxu0 %v3547_v23 }
 0xf34   : > { %3414 = vmatprep.subr.bf16.mxu0 %v3677_v27 }
 0xff2   : > { %v2449_v2 = vpop.f32.mrf.mxu0 }
 0xff3   : > { %v2455_v3 = vpack.c.bf16 %v2449_v2, %v2449_v2 }
 0xff4   : > { %v3404_v4 = vpop.f32.mrf.mxu0 }
 0xff5   : > { %3409 = vmatmul.mubr.msk.bf16.vlgmr.msra.gmra.mxu1 %vm1361_vm4, %v2455_v3 }
 0xff6   : > { %v2452_v5 = vpop.f32.mrf.mxu0  ;;  %3436 = vmatprep.mubr.msk.bf16.mxu1 %vm3678_vm3, %v3677_v27 }
 0xff8   : > { %v3405_v6 = vpop.f32.mrf.mxu0 }
0x10b5   : > { %v2496_v7 = vpop.f32.mrf.mxu1 }
0x10b6   : > { %v2502_v8 = vadd.f32 %v2496_v7, %v2172_v35  ;;  %v3549_v35 = vld [vmem:[%s3950_s26 + $0x38] sm:$0xff]  }
0x10b7   : > { %v3410_v10 = vpop.f32.mrf.mxu1  ;;  %3421 = vmatpush3.bf16.msra.mxu1 %v3549_v35 }
0x10b8   : > { %v2503_v11 = vadd.f32 %v2502_v8, %v3989_v19  ;;  %v3548_v19 = vld [vmem:[%s3941_s11] sm:$0xff]   ;;  %3422 = vmatprep.subr.bf16.mxu1 %v3677_v27 }
0x10b9   : > { %v2499_v12 = vpop.f32.mrf.mxu1  ;;  %3415 = vmatpush3.bf16.msra.mxu0 %v3548_v19 }
0x10ba   : > { %v4205_v13 = vadd.f32 %v3114_v9, %v2503_v11 }
0x10bb   : > { %v3411_v14 = vpop.f32.mrf.mxu1  ;;  %3423 = vmatpush3.bf16.msra.mxu1 %v3550_v36 }
0x10bc   : > { %v2514_v15 = vsel %vm1086_vm2, %v4205_v13, 0.0  ;;  %3424 = vmatprep.subr.bf16.mxu1 %v3677_v27 }
0x10bd   : > { %2515 = vadd.xlane.f32.xlu0 %v2514_v15 }
0x10bf   : > { %3425 = vmatpush3.bf16.msra.mxu1 %v3551_v37 }
0x10c0   : > { %3426 = vmatprep.subr.bf16.mxu1 %v3677_v27 }
0x10c3   : > { %3427 = vmatpush3.bf16.msra.mxu1 %v3552_v38 }
0x10c4   : > { %3428 = vmatprep.subr.bf16.mxu1 %v3677_v27 }
0x10c7   : > { %3429 = vmatpush3.bf16.msra.mxu1 %v3553_v40 }
0x10c8   : > { %3430 = vmatprep.subr.bf16.mxu1 %v3677_v27 }
0x10cb   : > { %3431 = vmatpush3.bf16.msra.mxu1 %v3554_v41 }
0x10cc   : > { %3432 = vmatprep.subr.bf16.mxu1 %v3677_v27 }
0x10cf   : > { %3433 = vmatpush3.bf16.msra.mxu1 %v3555_v42 }
0x10d0   : > { %3434 = vmatprep.subr.bf16.mxu1 %v3677_v27 }
0x10d3   : > { %3435 = vmatpush3.bf16.msra.mxu1 %v3556_v43 }
0x1146   : > { %v2516_v16 = vpop.xlane.xlu0 %2515 }
0x1147   : > { %v2517_v17 = vmul.f32 0.03125, %v2516_v16 }
0x1149   : > { %v2518_v20 = vsub.f32 %v4205_v13, %v2517_v17 }
0x114b   : > { %v2519_v21 = vmul.f32 %v2518_v20, %v2518_v20 }
0x114d   : > { %v2520_v22 = vsel %vm1086_vm2, %v2519_v21, 0.0 }
0x114e   : > { %2521 = vadd.xlane.f32.xlu1 %v2520_v22 }
0x11d7   : > { %v2522_v24 = vpop.xlane.xlu1 %2521 }
0x11d8   : > { %v2523_v25 = vmul.f32 0.03125, %v2522_v24 }
0x11da   : > { %v2524_v26 = vadd.f32 1e-06, %v2523_v25 }
0x11dc   : > { %3575 = vrsqrt.f32 %v2524_v26 }
0x11e9   : > { %v3576_v28 = vpop.eup %3575 }
0x11ea   : > { %v2526_v30 = vmul.f32 %v3576_v28, %v2518_v20 }
0x11ec   : > { %v2533_v32 = vmul.f32 %v3115_v29, %v2526_v30 }
0x11ee   : > { %v2540_v39 = vadd.f32 %v3116_v31, %v2533_v32 }
0x11f0   : > { %v2541_v33 = vpack.c.bf16 %v2540_v39, %v2540_v39 }
0x11f2   : > { %3417 = vmatmul.mubr.msk.bf16.vlgmr.msra.gmra.mxu0 %vm1086_vm2, %v2541_v33 }
0x12b2   : > { %v2602_v45 = vpop.f32.mrf.mxu0 }
0x12b3   : > { %v2603_v46 = vadd.f32 %v3117_v44, %v2602_v45 }
0x12b4   : > { %v3418_v47 = vpop.f32.mrf.mxu0 }
0x12b5   : > { %v2608_v48 = vmul.f32 %v2603_v46, %v2603_v46 }
0x12b6   : > { %v2605_v49 = vpop.f32.mrf.mxu0 }
0x12b7   : > { %v2609_v50 = vmul.f32 %v2608_v48, %v2603_v46 }
0x12b8   : > { %v3419_v18 = vpop.f32.mrf.mxu0 }
0x12b9   : > { %v2610_v34 = vmul.f32 0.044715, %v2609_v50 }
0x12bb   : > { %v2611_v51 = vadd.f32 %v2610_v34, %v2603_v46 }
0x12bd   : > { %v2612_v52 = vmul.f32 0.7978846, %v2611_v51 }
0x12bf   : > { %3577 = vtanh.f32 %v2612_v52 }
0x12cc   : > { %v3578_v53 = vpop.eup %3577 }
0x12cd   : > { %v2614_v27 = vadd.f32 1.0, %v3578_v53 }
0x12cf   : > { %v2615_v54 = vmul.f32 0.5, %v2614_v27 }
0x12d1   : > { %v2616_v55 = vmul.f32 %v2615_v54, %v2603_v46 }
0x12d3   : > { %v2617_v56 = vpack.c.bf16 %v2616_v55, %v2616_v55 }
0x12d5   : > { %3437 = vmatmul.mubr.bf16.vlgmr.msra.gmra.mxu1 %v2617_v56 }
0x1395   : > { %v2723_v58 = vpop.f32.mrf.mxu1 }
0x1396   : > { %v2724_v59 = vadd.f32 %v3121_v57, %v2723_v58 }
0x1397   : > { %v3438_v60 = vpop.f32.mrf.mxu1  ;;  %2734 = sbr.rel (%p3130_p1) target bundleno = 5329 (0x14d1), region = 116 }
0x1398   : > { %v2729_v61 = vadd.f32 %v2724_v59, %v4205_v13 }
0x1399   : > { %v2726_v62 = vpop.f32.mrf.mxu1 }
0x139a   : > { %2730 = vst.msk [vmem:[#allocation2] sm:$0xff] %vm1086_vm2, %v2729_v61 }
0x139b   : > { %v3439_v63 = vpop.f32.mrf.mxu1 }
0x139c   : > { %v2737_v0 = vsel %vm1086_vm2, %v2729_v61, 0.0  ;;  %v3131_v10 = vld [vmem:[%s4417_s22] ss:$0 sm:$0xff] }
0x139d   : > { %2738 = vadd.xlane.f32.xlu0 %v2737_v0  ;;  %v3132_v12 = vld [vmem:[%s4418_s29] ss:$0 sm:$0xff] }
0x1426   : > { %v2739_v1 = vpop.xlane.xlu0 %2738 }
0x1427   : > { %v2740_v2 = vmul.f32 0.03125, %v2739_v1 }
0x1429   : > { %v2741_v3 = vsub.f32 %v2729_v61, %v2740_v2 }
0x142b   : > { %v2742_v4 = vmul.f32 %v2741_v3, %v2741_v3 }
0x142d   : > { %v2743_v5 = vsel %vm1086_vm2, %v2742_v4, 0.0 }
0x142e   : > { %2744 = vadd.xlane.f32.xlu0 %v2743_v5 }
0x14b7   : > { %v2745_v6 = vpop.xlane.xlu0 %2744 }
0x14b8   : > { %v2746_v7 = vmul.f32 0.03125, %v2745_v6 }
0x14ba   : > { %v2747_v8 = vadd.f32 1e-06, %v2746_v7 }
0x14bc   : > { %3579 = vrsqrt.f32 %v2747_v8 }
0x14c9   : > { %v3580_v9 = vpop.eup %3579 }
0x14ca   : > { %v2749_v11 = vmul.f32 %v3580_v9, %v2741_v3 }
0x14cc   : > { %v2756_v13 = vmul.f32 %v3131_v10, %v2749_v11 }
0x14ce   : > { %v2763_v14 = vadd.f32 %v3132_v12, %v2756_v13 }
0x14d0   : > { %2764 = vst.msk [vmem:[%s892_s10] sm:$0xff] %vm1086_vm2, %v2763_v14 }
0x14d1 PF: > { %s4419_s20 = sld [smem:[#allocation10_spill]]  ;;  %s2779_s4 = sshll.u32 %s892_s10, 4  ;;  %s2780_s4 = int_to_ptr.vmem [resolvable:$true] %s2779_s4 }
0x14d2   : > { %s4420_s1 = sld [smem:[#allocation7_spill]]  ;;  %s3581_s11 = scalar_lea.vmem %s2780_s4, 128 }
0x14d3   : > { %s4422_s30 = sld [smem:[#allocation39_spill]]  ;;  %p3582_p2 = scmp.ne.s32.totalorder %s2780_s4, %s3581_s11 }
0x14d4   : > { %s3679_s21 = smov [#allocation3]  }
0x14d5   : > { %p3583_p4 = pnand %p3582_p2, %p3844_p3  ;;  %s3585_s26 = sshll.u32 %s3679_s21, 4  ;;  %s3586_s26 = int_to_ptr.vmem [resolvable:$false] %s3585_s26 }
0x14d6   : > { %s3587_s12 = scalar_lea.vmem %s3586_s26, 256  ;;  %p3588_p6 = scmp.lt.s32.totalorder %s2780_s4, %s3586_s26 }
0x14d7   : > { %s3134_s2 = sshll.u32 %s4419_s20, 7  ;;  %p3584_p5 = pneg %p3583_p4 }
0x14d8   : > { %s4424_s9 = sand.u32 1, %s4420_s1   ;;  %p3589_p7 = scmp.lt.s32.totalorder %s3587_s12, %s3581_s11 }
0x14d9   : > { %s4423_s8 = smov %s4422_s30  ;;  %s2777_s23 = scalar_lea.hbm %s4422_s30, %s3134_s2 }
0x14da   : > { %s2766_s6 = scalar_lea.sflag [#allocation4], %s4424_s9  ;;  %p3590_p8 = por %p3589_p7, %p3588_p6 }
0x14dc   : > { %p3591_p10 = pnand %p3590_p8, %p3584_p5 }
0x14de   : > { %3594 = shalt.err (!%p3591_p10)
}
0x14df   : > { %s3595_s5 = scalar_lea.hbm %s2777_s23, 128  ;;  %s3599_s18 = scalar_lea.hbm %s4423_s8, 256 }
0x14e0   : > { %p3596_p11 = scmp.ne.s32.totalorder %s2777_s23, %s3595_s5  ;;  %p3600_p0 = scmp.lt.s32.totalorder %s2777_s23, %s4423_s8 }
0x14e1   : > { %p3601_p1 = scmp.lt.s32.totalorder %s3599_s18, %s3595_s5 }
0x14e2   : > { %p3597_p12 = pnand %p3596_p11, %p3844_p3 }
0x14e3   : > { %p3602_p2 = por %p3601_p1, %p3600_p0 }
0x14e4   : > { %p3598_p13 = pneg %p3597_p12 }
0x14e6   : > { %p3603_p4 = pnand %p3602_p2, %p3598_p13 }
0x14e8   : > { %3606 = shalt.err (!%p3603_p4)
}
0x14e9   : > { %3440 = dma.vmem_to_hbm [thread:$0]  (%p3844_p3), %s2780_s4, 128, %s2777_s23, %s2766_s6  }
0x14ea PF: > { %s4425_s22 = sld [smem:[#allocation13_spill]] }
0x14eb   : > { %s4426_s27 = sld [smem:[#allocation6_spill]] }
0x14f0   : > { %p3446_p5 = scmp.ge.s32.totalorder %s4425_s22, 2 }
0x14f1   : > { %s2791_s29 = sand.u32 1, %s4426_s27  }
0x14f2   : > { %p3443_p6 = pnand %p3446_p5, %p3854_p9  ;;  %s2792_s20 = scalar_lea.sflag [#allocation4], %s2791_s29 }
0x14f4   : > { %p3444_p7 = pneg %p3443_p6 }
0x14f6   : > { %3640 = dma.done.wait (%p3444_p7), %s2792_s20, 128  }
0x14f7   : > { %3642 = vsyncadd (%p3444_p7), %s2792_s20, 4294967168  ;;  %s35_s1 = sadd.s32 1, %s4425_s22   ;;  %s4428_s3 = sld [smem:[#allocation7_spill]] }
0x14f8   : > { %p32_p8 = scmp.ge.s32.totalorder %s35_s1, 6   ;;  %s4429_s28 = sld [smem:[#allocation8_spill]] }
0x14f9   : > { %s4430_s29 = sld [smem:[#allocation18_spill]] }
0x14fa   : > { %s4431_s30 = sld [smem:[#allocation11_spill]]  ;;  %34 = sbr.rel (!%p32_p8) target bundleno = 25 (0x19), region = 199 }
0x14fb   : > { %s4432_s4 = sld [smem:[#allocation12_spill]] }
0x14fc   : > { %s4433_s0 = sld [smem:[#allocation14_spill]] }
0x14fd   : > { %s4434_s23 = sld [smem:[#allocation16_spill]] }
0x14ff   :  { %2797 = vsyncpa [#allocation4], 1 }
0x1500   :  { %2799 = vsyncpa [#allocation4 + $0x1], 1 }

</bundles_post_ra>
